<compile_context>
chip_gen: v7x
topology: tpu7x:2x2x1
jax: 0.10.0
libtpu: 0.0.40
codegen_flags: <defaults>
</compile_context>

<pallas_src>
import functools

import numpy as np
import jax
import jax.numpy as jnp
from jax import lax
from jax.experimental import pallas as pl
from jax.experimental.pallas import tpu as pltpu


# ----------------------------------------------------------------------------
# Pallas kernel
# ----------------------------------------------------------------------------
def _recurrent_convds_kernel(x_ref, taps_ref, pw_ref, bias_ref, o_ref,
                             *, t, W, C, ipb):
    R, HW = x_ref.shape                       # R = images_per_block * C

    x = x_ref[...].astype(jnp.float32)        # (R, HW), channel-major rows

    # Hoist every constant operand out of conv_block (traced t+1 times):
    #   9 masked depthwise tap planes (VMEM), C*C fused pointwise weights and
    #   C fused biases (SMEM scalars).
    taps = [taps_ref[k] for k in range(9)]                       # 9 x (R, HW)
    wgt = [[pw_ref[co, ci] for ci in range(C)] for co in range(C)]
    bias = [bias_ref[c] for c in range(C)]

    # Static lane shifts for the 3x3 stencil.  Zero-padding is handled by the
    # boundary masks folded into the tap planes, so the cyclic roll wrap is
    # harmless; roll never mixes rows (it acts on the lane axis only).
    shifts = [(-(dy * W + dx)) % HW for dy in (-1, 0, 1) for dx in (-1, 0, 1)]

    def shift_src(v, s):
        return v if s == 0 else pltpu.roll(v, s, axis=1)         # XLU vrot

    def conv_block(inp):
        # --- depthwise 3x3 (padding=1): 9 rolled MACs, fully sublane-packed ---
        row_accs = []
        for iy in range(3):
            acc = shift_src(inp, shifts[3 * iy]) * taps[3 * iy]
            acc = acc + shift_src(inp, shifts[3 * iy + 1]) * taps[3 * iy + 1]
            acc = acc + shift_src(inp, shifts[3 * iy + 2]) * taps[3 * iy + 2]
            row_accs.append(acc)
        dw = (row_accs[0] + row_accs[1]) + row_accs[2]           # (R, HW)

        # --- pointwise 1x1 + folded biases + folded BN + ReLU -----------------
        # Row-wise accumulation with SMEM scalar splats: no (C,C,HW) weight
        # planes, no cross-sublane broadcast_to inside the loop.
        dw_rows = [dw[r:r + 1, :] for r in range(R)]             # (1, HW) each
        out_rows = []
        for b in range(ipb):
            base = b * C
            for co in range(C):
                acc = dw_rows[base] * wgt[co][0]
                for ci in range(1, C):
                    acc = acc + dw_rows[base + ci] * wgt[co][ci]
                out_rows.append(jnp.maximum(acc + bias[co], 0.0))
        return jnp.concatenate(out_rows, axis=0)                 # (R, HW)

    # Recurrence from the PyTorch module (t >= 1):
    #   for i in range(t): if i == 0: x1 = conv(x);  x1 = conv(x + x1)
    x1 = conv_block(x)
    for _ in range(t):
        x1 = conv_block(x + x1)

    o_ref[...] = x1.astype(o_ref.dtype)


# ----------------------------------------------------------------------------
# Wrapper: folds parameters, repacks layout, launches the kernel
# ----------------------------------------------------------------------------
def recurrent_convds_unit(x_nchw, dw_w, dw_b, pw_w, pw_b, bn_scale, bn_shift, *, t=2):
    """x_nchw: (N, C, H, W); params in PyTorch layouts.  BN in inference mode."""
    assert t >= 1, "PyTorch module leaves x1 undefined for t == 0"
    N, C, H, W = x_nchw.shape
    HW = H * W
    f32 = jnp.float32

    # Images per block: smallest count whose row block fills all 8 sublanes and
    # divides N evenly; otherwise fall back to one full-array block (always a
    # layout-legal block shape).
    ipb = N
    for cand in range(1, N + 1):
        if N % cand == 0 and (cand * C) % 8 == 0:
            ipb = cand
            break
    R = ipb * C
    grid = (N // ipb,)

    x_flat = x_nchw.astype(f32).reshape(N * C, HW)   # pure reshape, no transpose

    # Depthwise taps with the zero-padding boundary mask folded in, tiled over
    # the images-per-block sublane groups: (9, R, HW).
    hh = jnp.arange(H)[:, None]
    ww = jnp.arange(W)[None, :]
    tap_planes = []
    for dy in (-1, 0, 1):
        for dx in (-1, 0, 1):
            valid = ((hh + dy >= 0) & (hh + dy < H) &
                     (ww + dx >= 0) & (ww + dx < W)).astype(f32).reshape(1, HW)
            w_c = dw_w[:, 0, dy + 1, dx + 1].astype(f32).reshape(C, 1)
            tap_planes.append(w_c * valid)
    taps = jnp.tile(jnp.stack(tap_planes, axis=0), (1, ipb, 1))   # (9, R, HW)

    # Fold pointwise weight + both conv biases + inference-mode BatchNorm into
    # a (C, C) weight table and a (C,) bias vector (consumed as SMEM scalars).
    pw = pw_w[:, :, 0, 0].astype(f32)                             # (co, ci)
    w_fused = pw * bn_scale.astype(f32)[:, None]                  # (C, C)
    bias_fused = ((pw @ dw_b.astype(f32)) + pw_b.astype(f32)) * bn_scale.astype(f32) \
        + bn_shift.astype(f32)                                    # (C,)

    kernel = functools.partial(_recurrent_convds_kernel, t=t, W=W, C=C, ipb=ipb)
    out_flat = pl.pallas_call(
        kernel,
        out_shape=jax.ShapeDtypeStruct((N * C, HW), f32),
        grid=grid,
        in_specs=[
            pl.BlockSpec((R, HW), lambda n: (n, 0)),              # packed input rows
            pl.BlockSpec((9, R, HW), lambda n: (0, 0, 0)),        # masked tap planes
            pl.BlockSpec(memory_space=pltpu.MemorySpace.SMEM),    # fused (C,C) weights
            pl.BlockSpec(memory_space=pltpu.MemorySpace.SMEM),    # fused (C,) bias
        ],
        out_specs=pl.BlockSpec((R, HW), lambda n: (n, 0)),
        compiler_params=pltpu.CompilerParams(
            dimension_semantics=("parallel",),
            vmem_limit_bytes=16 * 1024 * 1024),
    )(x_flat, taps, w_fused, bias_fused)

    return out_flat.reshape(N, C, H, W)


# ----------------------------------------------------------------------------
# Pure-JAX reference (mirrors the PyTorch NCHW module, BN in inference mode)
# ----------------------------------------------------------------------------
def _conv_block_ref(x, dw_w, dw_b, pw_w, pw_b, bn_scale, bn_shift):
    C = x.shape[1]
    y = lax.conv_general_dilated(
        x, dw_w, (1, 1), ((1, 1), (1, 1)),
        dimension_numbers=("NCHW", "OIHW", "NCHW"),
        feature_group_count=C, precision=lax.Precision.HIGHEST)
    y = y + dw_b.reshape(1, C, 1, 1)
    y = lax.conv_general_dilated(
        y, pw_w, (1, 1), "VALID",
        dimension_numbers=("NCHW", "OIHW", "NCHW"),
        precision=lax.Precision.HIGHEST)
    y = y + pw_b.reshape(1, C, 1, 1)
    y = y * bn_scale.reshape(1, C, 1, 1) + bn_shift.reshape(1, C, 1, 1)
    return jnp.maximum(y, 0.0)


def _ref_forward(x, params, t=2):
    x1 = _conv_block_ref(x, *params)
    for _ in range(t):
        x1 = _conv_block_ref(x + x1, *params)
    return x1


# ----------------------------------------------------------------------------
# Main
# ----------------------------------------------------------------------------
if __name__ == "__main__":
    N, C, H, W = 2, 4, 16, 16
    t = 2
    eps = 1e-5

    key = jax.random.PRNGKey(0)
    ks = jax.random.split(key, 9)

    # Input (PyTorch convention: NCHW).
    x_nchw = jax.random.normal(ks[0], (N, C, H, W), jnp.float32)

    # Parameters (shapes from the module __init__):
    #   depthwise Conv2d(C, C*1, k=3, pad=1, groups=C): weight (C,1,3,3), bias (C,)
    #   pointwise Conv2d(C, C, k=1):                    weight (C,C,1,1), bias (C,)
    #   BatchNorm2d(C): gamma, beta, running_mean, running_var
    dw_w = jax.random.normal(ks[1], (C, 1, 3, 3), jnp.float32) * 0.3
    dw_b = jax.random.normal(ks[2], (C,), jnp.float32) * 0.1
    pw_w = jax.random.normal(ks[3], (C, C, 1, 1), jnp.float32) * 0.3
    pw_b = jax.random.normal(ks[4], (C,), jnp.float32) * 0.1
    gamma = 1.0 + 0.1 * jax.random.normal(ks[5], (C,), jnp.float32)
    beta = 0.1 * jax.random.normal(ks[6], (C,), jnp.float32)
    run_mean = 0.1 * jax.random.normal(ks[7], (C,), jnp.float32)
    run_var = 0.5 + jax.random.uniform(ks[8], (C,), jnp.float32)

    # Fold BN (inference mode) into per-channel scale/shift.
    bn_scale = gamma / jnp.sqrt(run_var + eps)
    bn_shift = beta - run_mean * bn_scale

    out = recurrent_convds_unit(x_nchw, dw_w, dw_b, pw_w, pw_b,
                                bn_scale, bn_shift, t=t)
    out = jax.block_until_ready(out)

    # Verify against a plain-JAX reference of the PyTorch forward pass.
    ref = _ref_forward(x_nchw, (dw_w, dw_b, pw_w, pw_b, bn_scale, bn_shift), t=t)
    np.testing.assert_allclose(np.asarray(out), np.asarray(ref),
                               rtol=1e-3, atol=1e-3)

    print("KERNEL_OK")
</pallas_src>

<mosaic_0001>
module attributes {stable_mosaic.version = 11 : i64} {
  func.func @_recurrent_convds_kernel(%arg0: i32, %arg1: memref<8x256xf32, #tpu.memory_space<vmem>>, %arg2: memref<9x8x256xf32, #tpu.memory_space<vmem>>, %arg3: memref<4x4xf32, #tpu.memory_space<smem>>, %arg4: memref<4xf32, #tpu.memory_space<smem>>, %arg5: memref<8x256xf32, #tpu.memory_space<vmem>>) attributes {dimension_semantics = [#tpu.dimension_semantics<parallel>], iteration_bounds = array<i64: 1>, scalar_prefetch = 0 : i64, scratch_operands = 0 : i64, tpu.core_type = #tpu.core_type<tc>, window_params = [{transform_indices = @transform_0, window_bounds = array<i64: 8, 256>}, {pipeline_mode = #tpu.pipeline_mode<synchronous>, transform_indices = @transform_1, window_bounds = array<i64: 9, 8, 256>}, {transform_indices = @transform_2, window_bounds = array<i64: 4, 4>}, {transform_indices = @transform_3, window_bounds = array<i64: 4>}, {transform_indices = @transform_4, window_bounds = array<i64: 8, 256>}]} {
    %c0 = arith.constant 0 : index
    %c0_0 = arith.constant 0 : index
    %0 = vector.load %arg1[%c0, %c0_0] : memref<8x256xf32, #tpu.memory_space<vmem>>, vector<8x256xf32>
    %c0_1 = arith.constant 0 : index
    %c0_2 = arith.constant 0 : index
    %c0_3 = arith.constant 0 : index
    %1 = vector.load %arg2[%c0_1, %c0_2, %c0_3] : memref<9x8x256xf32, #tpu.memory_space<vmem>>, vector<1x8x256xf32>
    %2 = vector.shape_cast %1 : vector<1x8x256xf32> to vector<8x256xf32>
    %c1 = arith.constant 1 : index
    %c0_4 = arith.constant 0 : index
    %c0_5 = arith.constant 0 : index
    %3 = vector.load %arg2[%c1, %c0_4, %c0_5] : memref<9x8x256xf32, #tpu.memory_space<vmem>>, vector<1x8x256xf32>
    %4 = vector.shape_cast %3 : vector<1x8x256xf32> to vector<8x256xf32>
    %c2 = arith.constant 2 : index
    %c0_6 = arith.constant 0 : index
    %c0_7 = arith.constant 0 : index
    %5 = vector.load %arg2[%c2, %c0_6, %c0_7] : memref<9x8x256xf32, #tpu.memory_space<vmem>>, vector<1x8x256xf32>
    %6 = vector.shape_cast %5 : vector<1x8x256xf32> to vector<8x256xf32>
    %c3 = arith.constant 3 : index
    %c0_8 = arith.constant 0 : index
    %c0_9 = arith.constant 0 : index
    %7 = vector.load %arg2[%c3, %c0_8, %c0_9] : memref<9x8x256xf32, #tpu.memory_space<vmem>>, vector<1x8x256xf32>
    %8 = vector.shape_cast %7 : vector<1x8x256xf32> to vector<8x256xf32>
    %c4 = arith.constant 4 : index
    %c0_10 = arith.constant 0 : index
    %c0_11 = arith.constant 0 : index
    %9 = vector.load %arg2[%c4, %c0_10, %c0_11] : memref<9x8x256xf32, #tpu.memory_space<vmem>>, vector<1x8x256xf32>
    %10 = vector.shape_cast %9 : vector<1x8x256xf32> to vector<8x256xf32>
    %c5 = arith.constant 5 : index
    %c0_12 = arith.constant 0 : index
    %c0_13 = arith.constant 0 : index
    %11 = vector.load %arg2[%c5, %c0_12, %c0_13] : memref<9x8x256xf32, #tpu.memory_space<vmem>>, vector<1x8x256xf32>
    %12 = vector.shape_cast %11 : vector<1x8x256xf32> to vector<8x256xf32>
    %c6 = arith.constant 6 : index
    %c0_14 = arith.constant 0 : index
    %c0_15 = arith.constant 0 : index
    %13 = vector.load %arg2[%c6, %c0_14, %c0_15] : memref<9x8x256xf32, #tpu.memory_space<vmem>>, vector<1x8x256xf32>
    %14 = vector.shape_cast %13 : vector<1x8x256xf32> to vector<8x256xf32>
    %c7 = arith.constant 7 : index
    %c0_16 = arith.constant 0 : index
    %c0_17 = arith.constant 0 : index
    %15 = vector.load %arg2[%c7, %c0_16, %c0_17] : memref<9x8x256xf32, #tpu.memory_space<vmem>>, vector<1x8x256xf32>
    %16 = vector.shape_cast %15 : vector<1x8x256xf32> to vector<8x256xf32>
    %c8 = arith.constant 8 : index
    %c0_18 = arith.constant 0 : index
    %c0_19 = arith.constant 0 : index
    %17 = vector.load %arg2[%c8, %c0_18, %c0_19] : memref<9x8x256xf32, #tpu.memory_space<vmem>>, vector<1x8x256xf32>
    %18 = vector.shape_cast %17 : vector<1x8x256xf32> to vector<8x256xf32>
    %c0_20 = arith.constant 0 : index
    %c0_21 = arith.constant 0 : index
    %19 = memref.load %arg3[%c0_20, %c0_21] : memref<4x4xf32, #tpu.memory_space<smem>>
    %c0_22 = arith.constant 0 : index
    %c1_23 = arith.constant 1 : index
    %20 = memref.load %arg3[%c0_22, %c1_23] : memref<4x4xf32, #tpu.memory_space<smem>>
    %c0_24 = arith.constant 0 : index
    %c2_25 = arith.constant 2 : index
    %21 = memref.load %arg3[%c0_24, %c2_25] : memref<4x4xf32, #tpu.memory_space<smem>>
    %c0_26 = arith.constant 0 : index
    %c3_27 = arith.constant 3 : index
    %22 = memref.load %arg3[%c0_26, %c3_27] : memref<4x4xf32, #tpu.memory_space<smem>>
    %c1_28 = arith.constant 1 : index
    %c0_29 = arith.constant 0 : index
    %23 = memref.load %arg3[%c1_28, %c0_29] : memref<4x4xf32, #tpu.memory_space<smem>>
    %c1_30 = arith.constant 1 : index
    %c1_31 = arith.constant 1 : index
    %24 = memref.load %arg3[%c1_30, %c1_31] : memref<4x4xf32, #tpu.memory_space<smem>>
    %c1_32 = arith.constant 1 : index
    %c2_33 = arith.constant 2 : index
    %25 = memref.load %arg3[%c1_32, %c2_33] : memref<4x4xf32, #tpu.memory_space<smem>>
    %c1_34 = arith.constant 1 : index
    %c3_35 = arith.constant 3 : index
    %26 = memref.load %arg3[%c1_34, %c3_35] : memref<4x4xf32, #tpu.memory_space<smem>>
    %c2_36 = arith.constant 2 : index
    %c0_37 = arith.constant 0 : index
    %27 = memref.load %arg3[%c2_36, %c0_37] : memref<4x4xf32, #tpu.memory_space<smem>>
    %c2_38 = arith.constant 2 : index
    %c1_39 = arith.constant 1 : index
    %28 = memref.load %arg3[%c2_38, %c1_39] : memref<4x4xf32, #tpu.memory_space<smem>>
    %c2_40 = arith.constant 2 : index
    %c2_41 = arith.constant 2 : index
    %29 = memref.load %arg3[%c2_40, %c2_41] : memref<4x4xf32, #tpu.memory_space<smem>>
    %c2_42 = arith.constant 2 : index
    %c3_43 = arith.constant 3 : index
    %30 = memref.load %arg3[%c2_42, %c3_43] : memref<4x4xf32, #tpu.memory_space<smem>>
    %c3_44 = arith.constant 3 : index
    %c0_45 = arith.constant 0 : index
    %31 = memref.load %arg3[%c3_44, %c0_45] : memref<4x4xf32, #tpu.memory_space<smem>>
    %c3_46 = arith.constant 3 : index
    %c1_47 = arith.constant 1 : index
    %32 = memref.load %arg3[%c3_46, %c1_47] : memref<4x4xf32, #tpu.memory_space<smem>>
    %c3_48 = arith.constant 3 : index
    %c2_49 = arith.constant 2 : index
    %33 = memref.load %arg3[%c3_48, %c2_49] : memref<4x4xf32, #tpu.memory_space<smem>>
    %c3_50 = arith.constant 3 : index
    %c3_51 = arith.constant 3 : index
    %34 = memref.load %arg3[%c3_50, %c3_51] : memref<4x4xf32, #tpu.memory_space<smem>>
    %c0_52 = arith.constant 0 : index
    %35 = memref.load %arg4[%c0_52] : memref<4xf32, #tpu.memory_space<smem>>
    %c1_53 = arith.constant 1 : index
    %36 = memref.load %arg4[%c1_53] : memref<4xf32, #tpu.memory_space<smem>>
    %c2_54 = arith.constant 2 : index
    %37 = memref.load %arg4[%c2_54] : memref<4xf32, #tpu.memory_space<smem>>
    %c3_55 = arith.constant 3 : index
    %38 = memref.load %arg4[%c3_55] : memref<4xf32, #tpu.memory_space<smem>>
    %c17_i32 = arith.constant 17 : i32
    %39 = tpu.dynamic_rotate %0 by %c17_i32 dim 1 : vector<8x256xf32>, i32 -> vector<8x256xf32>
    %40 = arith.mulf %39, %2 : vector<8x256xf32>
    %c16_i32 = arith.constant 16 : i32
    %41 = tpu.dynamic_rotate %0 by %c16_i32 dim 1 : vector<8x256xf32>, i32 -> vector<8x256xf32>
    %42 = arith.mulf %41, %4 : vector<8x256xf32>
    %43 = arith.addf %40, %42 : vector<8x256xf32>
    %c15_i32 = arith.constant 15 : i32
    %44 = tpu.dynamic_rotate %0 by %c15_i32 dim 1 : vector<8x256xf32>, i32 -> vector<8x256xf32>
    %45 = arith.mulf %44, %6 : vector<8x256xf32>
    %46 = arith.addf %43, %45 : vector<8x256xf32>
    %c1_i32 = arith.constant 1 : i32
    %47 = tpu.dynamic_rotate %0 by %c1_i32 dim 1 : vector<8x256xf32>, i32 -> vector<8x256xf32>
    %48 = arith.mulf %47, %8 : vector<8x256xf32>
    %49 = arith.mulf %0, %10 : vector<8x256xf32>
    %50 = arith.addf %48, %49 : vector<8x256xf32>
    %c255_i32 = arith.constant 255 : i32
    %51 = tpu.dynamic_rotate %0 by %c255_i32 dim 1 : vector<8x256xf32>, i32 -> vector<8x256xf32>
    %52 = arith.mulf %51, %12 : vector<8x256xf32>
    %53 = arith.addf %50, %52 : vector<8x256xf32>
    %c241_i32 = arith.constant 241 : i32
    %54 = tpu.dynamic_rotate %0 by %c241_i32 dim 1 : vector<8x256xf32>, i32 -> vector<8x256xf32>
    %55 = arith.mulf %54, %14 : vector<8x256xf32>
    %c240_i32 = arith.constant 240 : i32
    %56 = tpu.dynamic_rotate %0 by %c240_i32 dim 1 : vector<8x256xf32>, i32 -> vector<8x256xf32>
    %57 = arith.mulf %56, %16 : vector<8x256xf32>
    %58 = arith.addf %55, %57 : vector<8x256xf32>
    %c239_i32 = arith.constant 239 : i32
    %59 = tpu.dynamic_rotate %0 by %c239_i32 dim 1 : vector<8x256xf32>, i32 -> vector<8x256xf32>
    %60 = arith.mulf %59, %18 : vector<8x256xf32>
    %61 = arith.addf %58, %60 : vector<8x256xf32>
    %62 = arith.addf %46, %53 : vector<8x256xf32>
    %63 = arith.addf %62, %61 : vector<8x256xf32>
    %64 = vector.extract_strided_slice %63 {offsets = [0, 0], sizes = [1, 256], strides = [1, 1]} : vector<8x256xf32> to vector<1x256xf32>
    %65 = vector.extract_strided_slice %63 {offsets = [1, 0], sizes = [1, 256], strides = [1, 1]} : vector<8x256xf32> to vector<1x256xf32>
    %66 = vector.extract_strided_slice %63 {offsets = [2, 0], sizes = [1, 256], strides = [1, 1]} : vector<8x256xf32> to vector<1x256xf32>
    %67 = vector.extract_strided_slice %63 {offsets = [3, 0], sizes = [1, 256], strides = [1, 1]} : vector<8x256xf32> to vector<1x256xf32>
    %68 = vector.extract_strided_slice %63 {offsets = [4, 0], sizes = [1, 256], strides = [1, 1]} : vector<8x256xf32> to vector<1x256xf32>
    %69 = vector.extract_strided_slice %63 {offsets = [5, 0], sizes = [1, 256], strides = [1, 1]} : vector<8x256xf32> to vector<1x256xf32>
    %70 = vector.extract_strided_slice %63 {offsets = [6, 0], sizes = [1, 256], strides = [1, 1]} : vector<8x256xf32> to vector<1x256xf32>
    %71 = vector.extract_strided_slice %63 {offsets = [7, 0], sizes = [1, 256], strides = [1, 1]} : vector<8x256xf32> to vector<1x256xf32>
    %72 = vector.broadcast %19 : f32 to vector<1x256xf32>
    %73 = arith.mulf %64, %72 : vector<1x256xf32>
    %74 = vector.broadcast %20 : f32 to vector<1x256xf32>
    %75 = arith.mulf %65, %74 : vector<1x256xf32>
    %76 = arith.addf %73, %75 : vector<1x256xf32>
    %77 = vector.broadcast %21 : f32 to vector<1x256xf32>
    %78 = arith.mulf %66, %77 : vector<1x256xf32>
    %79 = arith.addf %76, %78 : vector<1x256xf32>
    %80 = vector.broadcast %22 : f32 to vector<1x256xf32>
    %81 = arith.mulf %67, %80 : vector<1x256xf32>
    %82 = arith.addf %79, %81 : vector<1x256xf32>
    %83 = vector.broadcast %35 : f32 to vector<1x256xf32>
    %84 = arith.addf %82, %83 : vector<1x256xf32>
    %cst = arith.constant 0.000000e+00 : f32
    %85 = vector.broadcast %cst : f32 to vector<1x256xf32>
    %86 = arith.maximumf %84, %85 : vector<1x256xf32>
    %87 = vector.broadcast %23 : f32 to vector<1x256xf32>
    %88 = arith.mulf %64, %87 : vector<1x256xf32>
    %89 = vector.broadcast %24 : f32 to vector<1x256xf32>
    %90 = arith.mulf %65, %89 : vector<1x256xf32>
    %91 = arith.addf %88, %90 : vector<1x256xf32>
    %92 = vector.broadcast %25 : f32 to vector<1x256xf32>
    %93 = arith.mulf %66, %92 : vector<1x256xf32>
    %94 = arith.addf %91, %93 : vector<1x256xf32>
    %95 = vector.broadcast %26 : f32 to vector<1x256xf32>
    %96 = arith.mulf %67, %95 : vector<1x256xf32>
    %97 = arith.addf %94, %96 : vector<1x256xf32>
    %98 = vector.broadcast %36 : f32 to vector<1x256xf32>
    %99 = arith.addf %97, %98 : vector<1x256xf32>
    %cst_56 = arith.constant 0.000000e+00 : f32
    %100 = vector.broadcast %cst_56 : f32 to vector<1x256xf32>
    %101 = arith.maximumf %99, %100 : vector<1x256xf32>
    %102 = vector.broadcast %27 : f32 to vector<1x256xf32>
    %103 = arith.mulf %64, %102 : vector<1x256xf32>
    %104 = vector.broadcast %28 : f32 to vector<1x256xf32>
    %105 = arith.mulf %65, %104 : vector<1x256xf32>
    %106 = arith.addf %103, %105 : vector<1x256xf32>
    %107 = vector.broadcast %29 : f32 to vector<1x256xf32>
    %108 = arith.mulf %66, %107 : vector<1x256xf32>
    %109 = arith.addf %106, %108 : vector<1x256xf32>
    %110 = vector.broadcast %30 : f32 to vector<1x256xf32>
    %111 = arith.mulf %67, %110 : vector<1x256xf32>
    %112 = arith.addf %109, %111 : vector<1x256xf32>
    %113 = vector.broadcast %37 : f32 to vector<1x256xf32>
    %114 = arith.addf %112, %113 : vector<1x256xf32>
    %cst_57 = arith.constant 0.000000e+00 : f32
    %115 = vector.broadcast %cst_57 : f32 to vector<1x256xf32>
    %116 = arith.maximumf %114, %115 : vector<1x256xf32>
    %117 = vector.broadcast %31 : f32 to vector<1x256xf32>
    %118 = arith.mulf %64, %117 : vector<1x256xf32>
    %119 = vector.broadcast %32 : f32 to vector<1x256xf32>
    %120 = arith.mulf %65, %119 : vector<1x256xf32>
    %121 = arith.addf %118, %120 : vector<1x256xf32>
    %122 = vector.broadcast %33 : f32 to vector<1x256xf32>
    %123 = arith.mulf %66, %122 : vector<1x256xf32>
    %124 = arith.addf %121, %123 : vector<1x256xf32>
    %125 = vector.broadcast %34 : f32 to vector<1x256xf32>
    %126 = arith.mulf %67, %125 : vector<1x256xf32>
    %127 = arith.addf %124, %126 : vector<1x256xf32>
    %128 = vector.broadcast %38 : f32 to vector<1x256xf32>
    %129 = arith.addf %127, %128 : vector<1x256xf32>
    %cst_58 = arith.constant 0.000000e+00 : f32
    %130 = vector.broadcast %cst_58 : f32 to vector<1x256xf32>
    %131 = arith.maximumf %129, %130 : vector<1x256xf32>
    %132 = vector.broadcast %19 : f32 to vector<1x256xf32>
    %133 = arith.mulf %68, %132 : vector<1x256xf32>
    %134 = vector.broadcast %20 : f32 to vector<1x256xf32>
    %135 = arith.mulf %69, %134 : vector<1x256xf32>
    %136 = arith.addf %133, %135 : vector<1x256xf32>
    %137 = vector.broadcast %21 : f32 to vector<1x256xf32>
    %138 = arith.mulf %70, %137 : vector<1x256xf32>
    %139 = arith.addf %136, %138 : vector<1x256xf32>
    %140 = vector.broadcast %22 : f32 to vector<1x256xf32>
    %141 = arith.mulf %71, %140 : vector<1x256xf32>
    %142 = arith.addf %139, %141 : vector<1x256xf32>
    %143 = vector.broadcast %35 : f32 to vector<1x256xf32>
    %144 = arith.addf %142, %143 : vector<1x256xf32>
    %cst_59 = arith.constant 0.000000e+00 : f32
    %145 = vector.broadcast %cst_59 : f32 to vector<1x256xf32>
    %146 = arith.maximumf %144, %145 : vector<1x256xf32>
    %147 = vector.broadcast %23 : f32 to vector<1x256xf32>
    %148 = arith.mulf %68, %147 : vector<1x256xf32>
    %149 = vector.broadcast %24 : f32 to vector<1x256xf32>
    %150 = arith.mulf %69, %149 : vector<1x256xf32>
    %151 = arith.addf %148, %150 : vector<1x256xf32>
    %152 = vector.broadcast %25 : f32 to vector<1x256xf32>
    %153 = arith.mulf %70, %152 : vector<1x256xf32>
    %154 = arith.addf %151, %153 : vector<1x256xf32>
    %155 = vector.broadcast %26 : f32 to vector<1x256xf32>
    %156 = arith.mulf %71, %155 : vector<1x256xf32>
    %157 = arith.addf %154, %156 : vector<1x256xf32>
    %158 = vector.broadcast %36 : f32 to vector<1x256xf32>
    %159 = arith.addf %157, %158 : vector<1x256xf32>
    %cst_60 = arith.constant 0.000000e+00 : f32
    %160 = vector.broadcast %cst_60 : f32 to vector<1x256xf32>
    %161 = arith.maximumf %159, %160 : vector<1x256xf32>
    %162 = vector.broadcast %27 : f32 to vector<1x256xf32>
    %163 = arith.mulf %68, %162 : vector<1x256xf32>
    %164 = vector.broadcast %28 : f32 to vector<1x256xf32>
    %165 = arith.mulf %69, %164 : vector<1x256xf32>
    %166 = arith.addf %163, %165 : vector<1x256xf32>
    %167 = vector.broadcast %29 : f32 to vector<1x256xf32>
    %168 = arith.mulf %70, %167 : vector<1x256xf32>
    %169 = arith.addf %166, %168 : vector<1x256xf32>
    %170 = vector.broadcast %30 : f32 to vector<1x256xf32>
    %171 = arith.mulf %71, %170 : vector<1x256xf32>
    %172 = arith.addf %169, %171 : vector<1x256xf32>
    %173 = vector.broadcast %37 : f32 to vector<1x256xf32>
    %174 = arith.addf %172, %173 : vector<1x256xf32>
    %cst_61 = arith.constant 0.000000e+00 : f32
    %175 = vector.broadcast %cst_61 : f32 to vector<1x256xf32>
    %176 = arith.maximumf %174, %175 : vector<1x256xf32>
    %177 = vector.broadcast %31 : f32 to vector<1x256xf32>
    %178 = arith.mulf %68, %177 : vector<1x256xf32>
    %179 = vector.broadcast %32 : f32 to vector<1x256xf32>
    %180 = arith.mulf %69, %179 : vector<1x256xf32>
    %181 = arith.addf %178, %180 : vector<1x256xf32>
    %182 = vector.broadcast %33 : f32 to vector<1x256xf32>
    %183 = arith.mulf %70, %182 : vector<1x256xf32>
    %184 = arith.addf %181, %183 : vector<1x256xf32>
    %185 = vector.broadcast %34 : f32 to vector<1x256xf32>
    %186 = arith.mulf %71, %185 : vector<1x256xf32>
    %187 = arith.addf %184, %186 : vector<1x256xf32>
    %188 = vector.broadcast %38 : f32 to vector<1x256xf32>
    %189 = arith.addf %187, %188 : vector<1x256xf32>
    %cst_62 = arith.constant 0.000000e+00 : f32
    %190 = vector.broadcast %cst_62 : f32 to vector<1x256xf32>
    %191 = arith.maximumf %189, %190 : vector<1x256xf32>
    %192 = tpu.concatenate %86, %101, %116, %131, %146, %161, %176, %191 in 0 : vector<1x256xf32>, vector<1x256xf32>, vector<1x256xf32>, vector<1x256xf32>, vector<1x256xf32>, vector<1x256xf32>, vector<1x256xf32>, vector<1x256xf32> -> vector<8x256xf32>
    %193 = arith.addf %0, %192 : vector<8x256xf32>
    %c17_i32_63 = arith.constant 17 : i32
    %194 = tpu.dynamic_rotate %193 by %c17_i32_63 dim 1 : vector<8x256xf32>, i32 -> vector<8x256xf32>
    %195 = arith.mulf %194, %2 : vector<8x256xf32>
    %c16_i32_64 = arith.constant 16 : i32
    %196 = tpu.dynamic_rotate %193 by %c16_i32_64 dim 1 : vector<8x256xf32>, i32 -> vector<8x256xf32>
    %197 = arith.mulf %196, %4 : vector<8x256xf32>
    %198 = arith.addf %195, %197 : vector<8x256xf32>
    %c15_i32_65 = arith.constant 15 : i32
    %199 = tpu.dynamic_rotate %193 by %c15_i32_65 dim 1 : vector<8x256xf32>, i32 -> vector<8x256xf32>
    %200 = arith.mulf %199, %6 : vector<8x256xf32>
    %201 = arith.addf %198, %200 : vector<8x256xf32>
    %c1_i32_66 = arith.constant 1 : i32
    %202 = tpu.dynamic_rotate %193 by %c1_i32_66 dim 1 : vector<8x256xf32>, i32 -> vector<8x256xf32>
    %203 = arith.mulf %202, %8 : vector<8x256xf32>
    %204 = arith.mulf %193, %10 : vector<8x256xf32>
    %205 = arith.addf %203, %204 : vector<8x256xf32>
    %c255_i32_67 = arith.constant 255 : i32
    %206 = tpu.dynamic_rotate %193 by %c255_i32_67 dim 1 : vector<8x256xf32>, i32 -> vector<8x256xf32>
    %207 = arith.mulf %206, %12 : vector<8x256xf32>
    %208 = arith.addf %205, %207 : vector<8x256xf32>
    %c241_i32_68 = arith.constant 241 : i32
    %209 = tpu.dynamic_rotate %193 by %c241_i32_68 dim 1 : vector<8x256xf32>, i32 -> vector<8x256xf32>
    %210 = arith.mulf %209, %14 : vector<8x256xf32>
    %c240_i32_69 = arith.constant 240 : i32
    %211 = tpu.dynamic_rotate %193 by %c240_i32_69 dim 1 : vector<8x256xf32>, i32 -> vector<8x256xf32>
    %212 = arith.mulf %211, %16 : vector<8x256xf32>
    %213 = arith.addf %210, %212 : vector<8x256xf32>
    %c239_i32_70 = arith.constant 239 : i32
    %214 = tpu.dynamic_rotate %193 by %c239_i32_70 dim 1 : vector<8x256xf32>, i32 -> vector<8x256xf32>
    %215 = arith.mulf %214, %18 : vector<8x256xf32>
    %216 = arith.addf %213, %215 : vector<8x256xf32>
    %217 = arith.addf %201, %208 : vector<8x256xf32>
    %218 = arith.addf %217, %216 : vector<8x256xf32>
    %219 = vector.extract_strided_slice %218 {offsets = [0, 0], sizes = [1, 256], strides = [1, 1]} : vector<8x256xf32> to vector<1x256xf32>
    %220 = vector.extract_strided_slice %218 {offsets = [1, 0], sizes = [1, 256], strides = [1, 1]} : vector<8x256xf32> to vector<1x256xf32>
    %221 = vector.extract_strided_slice %218 {offsets = [2, 0], sizes = [1, 256], strides = [1, 1]} : vector<8x256xf32> to vector<1x256xf32>
    %222 = vector.extract_strided_slice %218 {offsets = [3, 0], sizes = [1, 256], strides = [1, 1]} : vector<8x256xf32> to vector<1x256xf32>
    %223 = vector.extract_strided_slice %218 {offsets = [4, 0], sizes = [1, 256], strides = [1, 1]} : vector<8x256xf32> to vector<1x256xf32>
    %224 = vector.extract_strided_slice %218 {offsets = [5, 0], sizes = [1, 256], strides = [1, 1]} : vector<8x256xf32> to vector<1x256xf32>
    %225 = vector.extract_strided_slice %218 {offsets = [6, 0], sizes = [1, 256], strides = [1, 1]} : vector<8x256xf32> to vector<1x256xf32>
    %226 = vector.extract_strided_slice %218 {offsets = [7, 0], sizes = [1, 256], strides = [1, 1]} : vector<8x256xf32> to vector<1x256xf32>
    %227 = vector.broadcast %19 : f32 to vector<1x256xf32>
    %228 = arith.mulf %219, %227 : vector<1x256xf32>
    %229 = vector.broadcast %20 : f32 to vector<1x256xf32>
    %230 = arith.mulf %220, %229 : vector<1x256xf32>
    %231 = arith.addf %228, %230 : vector<1x256xf32>
    %232 = vector.broadcast %21 : f32 to vector<1x256xf32>
    %233 = arith.mulf %221, %232 : vector<1x256xf32>
    %234 = arith.addf %231, %233 : vector<1x256xf32>
    %235 = vector.broadcast %22 : f32 to vector<1x256xf32>
    %236 = arith.mulf %222, %235 : vector<1x256xf32>
    %237 = arith.addf %234, %236 : vector<1x256xf32>
    %238 = vector.broadcast %35 : f32 to vector<1x256xf32>
    %239 = arith.addf %237, %238 : vector<1x256xf32>
    %cst_71 = arith.constant 0.000000e+00 : f32
    %240 = vector.broadcast %cst_71 : f32 to vector<1x256xf32>
    %241 = arith.maximumf %239, %240 : vector<1x256xf32>
    %242 = vector.broadcast %23 : f32 to vector<1x256xf32>
    %243 = arith.mulf %219, %242 : vector<1x256xf32>
    %244 = vector.broadcast %24 : f32 to vector<1x256xf32>
    %245 = arith.mulf %220, %244 : vector<1x256xf32>
    %246 = arith.addf %243, %245 : vector<1x256xf32>
    %247 = vector.broadcast %25 : f32 to vector<1x256xf32>
    %248 = arith.mulf %221, %247 : vector<1x256xf32>
    %249 = arith.addf %246, %248 : vector<1x256xf32>
    %250 = vector.broadcast %26 : f32 to vector<1x256xf32>
    %251 = arith.mulf %222, %250 : vector<1x256xf32>
    %252 = arith.addf %249, %251 : vector<1x256xf32>
    %253 = vector.broadcast %36 : f32 to vector<1x256xf32>
    %254 = arith.addf %252, %253 : vector<1x256xf32>
    %cst_72 = arith.constant 0.000000e+00 : f32
    %255 = vector.broadcast %cst_72 : f32 to vector<1x256xf32>
    %256 = arith.maximumf %254, %255 : vector<1x256xf32>
    %257 = vector.broadcast %27 : f32 to vector<1x256xf32>
    %258 = arith.mulf %219, %257 : vector<1x256xf32>
    %259 = vector.broadcast %28 : f32 to vector<1x256xf32>
    %260 = arith.mulf %220, %259 : vector<1x256xf32>
    %261 = arith.addf %258, %260 : vector<1x256xf32>
    %262 = vector.broadcast %29 : f32 to vector<1x256xf32>
    %263 = arith.mulf %221, %262 : vector<1x256xf32>
    %264 = arith.addf %261, %263 : vector<1x256xf32>
    %265 = vector.broadcast %30 : f32 to vector<1x256xf32>
    %266 = arith.mulf %222, %265 : vector<1x256xf32>
    %267 = arith.addf %264, %266 : vector<1x256xf32>
    %268 = vector.broadcast %37 : f32 to vector<1x256xf32>
    %269 = arith.addf %267, %268 : vector<1x256xf32>
    %cst_73 = arith.constant 0.000000e+00 : f32
    %270 = vector.broadcast %cst_73 : f32 to vector<1x256xf32>
    %271 = arith.maximumf %269, %270 : vector<1x256xf32>
    %272 = vector.broadcast %31 : f32 to vector<1x256xf32>
    %273 = arith.mulf %219, %272 : vector<1x256xf32>
    %274 = vector.broadcast %32 : f32 to vector<1x256xf32>
    %275 = arith.mulf %220, %274 : vector<1x256xf32>
    %276 = arith.addf %273, %275 : vector<1x256xf32>
    %277 = vector.broadcast %33 : f32 to vector<1x256xf32>
    %278 = arith.mulf %221, %277 : vector<1x256xf32>
    %279 = arith.addf %276, %278 : vector<1x256xf32>
    %280 = vector.broadcast %34 : f32 to vector<1x256xf32>
    %281 = arith.mulf %222, %280 : vector<1x256xf32>
    %282 = arith.addf %279, %281 : vector<1x256xf32>
    %283 = vector.broadcast %38 : f32 to vector<1x256xf32>
    %284 = arith.addf %282, %283 : vector<1x256xf32>
    %cst_74 = arith.constant 0.000000e+00 : f32
    %285 = vector.broadcast %cst_74 : f32 to vector<1x256xf32>
    %286 = arith.maximumf %284, %285 : vector<1x256xf32>
    %287 = vector.broadcast %19 : f32 to vector<1x256xf32>
    %288 = arith.mulf %223, %287 : vector<1x256xf32>
    %289 = vector.broadcast %20 : f32 to vector<1x256xf32>
    %290 = arith.mulf %224, %289 : vector<1x256xf32>
    %291 = arith.addf %288, %290 : vector<1x256xf32>
    %292 = vector.broadcast %21 : f32 to vector<1x256xf32>
    %293 = arith.mulf %225, %292 : vector<1x256xf32>
    %294 = arith.addf %291, %293 : vector<1x256xf32>
    %295 = vector.broadcast %22 : f32 to vector<1x256xf32>
    %296 = arith.mulf %226, %295 : vector<1x256xf32>
    %297 = arith.addf %294, %296 : vector<1x256xf32>
    %298 = vector.broadcast %35 : f32 to vector<1x256xf32>
    %299 = arith.addf %297, %298 : vector<1x256xf32>
    %cst_75 = arith.constant 0.000000e+00 : f32
    %300 = vector.broadcast %cst_75 : f32 to vector<1x256xf32>
    %301 = arith.maximumf %299, %300 : vector<1x256xf32>
    %302 = vector.broadcast %23 : f32 to vector<1x256xf32>
    %303 = arith.mulf %223, %302 : vector<1x256xf32>
    %304 = vector.broadcast %24 : f32 to vector<1x256xf32>
    %305 = arith.mulf %224, %304 : vector<1x256xf32>
    %306 = arith.addf %303, %305 : vector<1x256xf32>
    %307 = vector.broadcast %25 : f32 to vector<1x256xf32>
    %308 = arith.mulf %225, %307 : vector<1x256xf32>
    %309 = arith.addf %306, %308 : vector<1x256xf32>
    %310 = vector.broadcast %26 : f32 to vector<1x256xf32>
    %311 = arith.mulf %226, %310 : vector<1x256xf32>
    %312 = arith.addf %309, %311 : vector<1x256xf32>
    %313 = vector.broadcast %36 : f32 to vector<1x256xf32>
    %314 = arith.addf %312, %313 : vector<1x256xf32>
    %cst_76 = arith.constant 0.000000e+00 : f32
    %315 = vector.broadcast %cst_76 : f32 to vector<1x256xf32>
    %316 = arith.maximumf %314, %315 : vector<1x256xf32>
    %317 = vector.broadcast %27 : f32 to vector<1x256xf32>
    %318 = arith.mulf %223, %317 : vector<1x256xf32>
    %319 = vector.broadcast %28 : f32 to vector<1x256xf32>
    %320 = arith.mulf %224, %319 : vector<1x256xf32>
    %321 = arith.addf %318, %320 : vector<1x256xf32>
    %322 = vector.broadcast %29 : f32 to vector<1x256xf32>
    %323 = arith.mulf %225, %322 : vector<1x256xf32>
    %324 = arith.addf %321, %323 : vector<1x256xf32>
    %325 = vector.broadcast %30 : f32 to vector<1x256xf32>
    %326 = arith.mulf %226, %325 : vector<1x256xf32>
    %327 = arith.addf %324, %326 : vector<1x256xf32>
    %328 = vector.broadcast %37 : f32 to vector<1x256xf32>
    %329 = arith.addf %327, %328 : vector<1x256xf32>
    %cst_77 = arith.constant 0.000000e+00 : f32
    %330 = vector.broadcast %cst_77 : f32 to vector<1x256xf32>
    %331 = arith.maximumf %329, %330 : vector<1x256xf32>
    %332 = vector.broadcast %31 : f32 to vector<1x256xf32>
    %333 = arith.mulf %223, %332 : vector<1x256xf32>
    %334 = vector.broadcast %32 : f32 to vector<1x256xf32>
    %335 = arith.mulf %224, %334 : vector<1x256xf32>
    %336 = arith.addf %333, %335 : vector<1x256xf32>
    %337 = vector.broadcast %33 : f32 to vector<1x256xf32>
    %338 = arith.mulf %225, %337 : vector<1x256xf32>
    %339 = arith.addf %336, %338 : vector<1x256xf32>
    %340 = vector.broadcast %34 : f32 to vector<1x256xf32>
    %341 = arith.mulf %226, %340 : vector<1x256xf32>
    %342 = arith.addf %339, %341 : vector<1x256xf32>
    %343 = vector.broadcast %38 : f32 to vector<1x256xf32>
    %344 = arith.addf %342, %343 : vector<1x256xf32>
    %cst_78 = arith.constant 0.000000e+00 : f32
    %345 = vector.broadcast %cst_78 : f32 to vector<1x256xf32>
    %346 = arith.maximumf %344, %345 : vector<1x256xf32>
    %347 = tpu.concatenate %241, %256, %271, %286, %301, %316, %331, %346 in 0 : vector<1x256xf32>, vector<1x256xf32>, vector<1x256xf32>, vector<1x256xf32>, vector<1x256xf32>, vector<1x256xf32>, vector<1x256xf32>, vector<1x256xf32> -> vector<8x256xf32>
    %348 = arith.addf %0, %347 : vector<8x256xf32>
    %c17_i32_79 = arith.constant 17 : i32
    %349 = tpu.dynamic_rotate %348 by %c17_i32_79 dim 1 : vector<8x256xf32>, i32 -> vector<8x256xf32>
    %350 = arith.mulf %349, %2 : vector<8x256xf32>
    %c16_i32_80 = arith.constant 16 : i32
    %351 = tpu.dynamic_rotate %348 by %c16_i32_80 dim 1 : vector<8x256xf32>, i32 -> vector<8x256xf32>
    %352 = arith.mulf %351, %4 : vector<8x256xf32>
    %353 = arith.addf %350, %352 : vector<8x256xf32>
    %c15_i32_81 = arith.constant 15 : i32
    %354 = tpu.dynamic_rotate %348 by %c15_i32_81 dim 1 : vector<8x256xf32>, i32 -> vector<8x256xf32>
    %355 = arith.mulf %354, %6 : vector<8x256xf32>
    %356 = arith.addf %353, %355 : vector<8x256xf32>
    %c1_i32_82 = arith.constant 1 : i32
    %357 = tpu.dynamic_rotate %348 by %c1_i32_82 dim 1 : vector<8x256xf32>, i32 -> vector<8x256xf32>
    %358 = arith.mulf %357, %8 : vector<8x256xf32>
    %359 = arith.mulf %348, %10 : vector<8x256xf32>
    %360 = arith.addf %358, %359 : vector<8x256xf32>
    %c255_i32_83 = arith.constant 255 : i32
    %361 = tpu.dynamic_rotate %348 by %c255_i32_83 dim 1 : vector<8x256xf32>, i32 -> vector<8x256xf32>
    %362 = arith.mulf %361, %12 : vector<8x256xf32>
    %363 = arith.addf %360, %362 : vector<8x256xf32>
    %c241_i32_84 = arith.constant 241 : i32
    %364 = tpu.dynamic_rotate %348 by %c241_i32_84 dim 1 : vector<8x256xf32>, i32 -> vector<8x256xf32>
    %365 = arith.mulf %364, %14 : vector<8x256xf32>
    %c240_i32_85 = arith.constant 240 : i32
    %366 = tpu.dynamic_rotate %348 by %c240_i32_85 dim 1 : vector<8x256xf32>, i32 -> vector<8x256xf32>
    %367 = arith.mulf %366, %16 : vector<8x256xf32>
    %368 = arith.addf %365, %367 : vector<8x256xf32>
    %c239_i32_86 = arith.constant 239 : i32
    %369 = tpu.dynamic_rotate %348 by %c239_i32_86 dim 1 : vector<8x256xf32>, i32 -> vector<8x256xf32>
    %370 = arith.mulf %369, %18 : vector<8x256xf32>
    %371 = arith.addf %368, %370 : vector<8x256xf32>
    %372 = arith.addf %356, %363 : vector<8x256xf32>
    %373 = arith.addf %372, %371 : vector<8x256xf32>
    %374 = vector.extract_strided_slice %373 {offsets = [0, 0], sizes = [1, 256], strides = [1, 1]} : vector<8x256xf32> to vector<1x256xf32>
    %375 = vector.extract_strided_slice %373 {offsets = [1, 0], sizes = [1, 256], strides = [1, 1]} : vector<8x256xf32> to vector<1x256xf32>
    %376 = vector.extract_strided_slice %373 {offsets = [2, 0], sizes = [1, 256], strides = [1, 1]} : vector<8x256xf32> to vector<1x256xf32>
    %377 = vector.extract_strided_slice %373 {offsets = [3, 0], sizes = [1, 256], strides = [1, 1]} : vector<8x256xf32> to vector<1x256xf32>
    %378 = vector.extract_strided_slice %373 {offsets = [4, 0], sizes = [1, 256], strides = [1, 1]} : vector<8x256xf32> to vector<1x256xf32>
    %379 = vector.extract_strided_slice %373 {offsets = [5, 0], sizes = [1, 256], strides = [1, 1]} : vector<8x256xf32> to vector<1x256xf32>
    %380 = vector.extract_strided_slice %373 {offsets = [6, 0], sizes = [1, 256], strides = [1, 1]} : vector<8x256xf32> to vector<1x256xf32>
    %381 = vector.extract_strided_slice %373 {offsets = [7, 0], sizes = [1, 256], strides = [1, 1]} : vector<8x256xf32> to vector<1x256xf32>
    %382 = vector.broadcast %19 : f32 to vector<1x256xf32>
    %383 = arith.mulf %374, %382 : vector<1x256xf32>
    %384 = vector.broadcast %20 : f32 to vector<1x256xf32>
    %385 = arith.mulf %375, %384 : vector<1x256xf32>
    %386 = arith.addf %383, %385 : vector<1x256xf32>
    %387 = vector.broadcast %21 : f32 to vector<1x256xf32>
    %388 = arith.mulf %376, %387 : vector<1x256xf32>
    %389 = arith.addf %386, %388 : vector<1x256xf32>
    %390 = vector.broadcast %22 : f32 to vector<1x256xf32>
    %391 = arith.mulf %377, %390 : vector<1x256xf32>
    %392 = arith.addf %389, %391 : vector<1x256xf32>
    %393 = vector.broadcast %35 : f32 to vector<1x256xf32>
    %394 = arith.addf %392, %393 : vector<1x256xf32>
    %cst_87 = arith.constant 0.000000e+00 : f32
    %395 = vector.broadcast %cst_87 : f32 to vector<1x256xf32>
    %396 = arith.maximumf %394, %395 : vector<1x256xf32>
    %397 = vector.broadcast %23 : f32 to vector<1x256xf32>
    %398 = arith.mulf %374, %397 : vector<1x256xf32>
    %399 = vector.broadcast %24 : f32 to vector<1x256xf32>
    %400 = arith.mulf %375, %399 : vector<1x256xf32>
    %401 = arith.addf %398, %400 : vector<1x256xf32>
    %402 = vector.broadcast %25 : f32 to vector<1x256xf32>
    %403 = arith.mulf %376, %402 : vector<1x256xf32>
    %404 = arith.addf %401, %403 : vector<1x256xf32>
    %405 = vector.broadcast %26 : f32 to vector<1x256xf32>
    %406 = arith.mulf %377, %405 : vector<1x256xf32>
    %407 = arith.addf %404, %406 : vector<1x256xf32>
    %408 = vector.broadcast %36 : f32 to vector<1x256xf32>
    %409 = arith.addf %407, %408 : vector<1x256xf32>
    %cst_88 = arith.constant 0.000000e+00 : f32
    %410 = vector.broadcast %cst_88 : f32 to vector<1x256xf32>
    %411 = arith.maximumf %409, %410 : vector<1x256xf32>
    %412 = vector.broadcast %27 : f32 to vector<1x256xf32>
    %413 = arith.mulf %374, %412 : vector<1x256xf32>
    %414 = vector.broadcast %28 : f32 to vector<1x256xf32>
    %415 = arith.mulf %375, %414 : vector<1x256xf32>
    %416 = arith.addf %413, %415 : vector<1x256xf32>
    %417 = vector.broadcast %29 : f32 to vector<1x256xf32>
    %418 = arith.mulf %376, %417 : vector<1x256xf32>
    %419 = arith.addf %416, %418 : vector<1x256xf32>
    %420 = vector.broadcast %30 : f32 to vector<1x256xf32>
    %421 = arith.mulf %377, %420 : vector<1x256xf32>
    %422 = arith.addf %419, %421 : vector<1x256xf32>
    %423 = vector.broadcast %37 : f32 to vector<1x256xf32>
    %424 = arith.addf %422, %423 : vector<1x256xf32>
    %cst_89 = arith.constant 0.000000e+00 : f32
    %425 = vector.broadcast %cst_89 : f32 to vector<1x256xf32>
    %426 = arith.maximumf %424, %425 : vector<1x256xf32>
    %427 = vector.broadcast %31 : f32 to vector<1x256xf32>
    %428 = arith.mulf %374, %427 : vector<1x256xf32>
    %429 = vector.broadcast %32 : f32 to vector<1x256xf32>
    %430 = arith.mulf %375, %429 : vector<1x256xf32>
    %431 = arith.addf %428, %430 : vector<1x256xf32>
    %432 = vector.broadcast %33 : f32 to vector<1x256xf32>
    %433 = arith.mulf %376, %432 : vector<1x256xf32>
    %434 = arith.addf %431, %433 : vector<1x256xf32>
    %435 = vector.broadcast %34 : f32 to vector<1x256xf32>
    %436 = arith.mulf %377, %435 : vector<1x256xf32>
    %437 = arith.addf %434, %436 : vector<1x256xf32>
    %438 = vector.broadcast %38 : f32 to vector<1x256xf32>
    %439 = arith.addf %437, %438 : vector<1x256xf32>
    %cst_90 = arith.constant 0.000000e+00 : f32
    %440 = vector.broadcast %cst_90 : f32 to vector<1x256xf32>
    %441 = arith.maximumf %439, %440 : vector<1x256xf32>
    %442 = vector.broadcast %19 : f32 to vector<1x256xf32>
    %443 = arith.mulf %378, %442 : vector<1x256xf32>
    %444 = vector.broadcast %20 : f32 to vector<1x256xf32>
    %445 = arith.mulf %379, %444 : vector<1x256xf32>
    %446 = arith.addf %443, %445 : vector<1x256xf32>
    %447 = vector.broadcast %21 : f32 to vector<1x256xf32>
    %448 = arith.mulf %380, %447 : vector<1x256xf32>
    %449 = arith.addf %446, %448 : vector<1x256xf32>
    %450 = vector.broadcast %22 : f32 to vector<1x256xf32>
    %451 = arith.mulf %381, %450 : vector<1x256xf32>
    %452 = arith.addf %449, %451 : vector<1x256xf32>
    %453 = vector.broadcast %35 : f32 to vector<1x256xf32>
    %454 = arith.addf %452, %453 : vector<1x256xf32>
    %cst_91 = arith.constant 0.000000e+00 : f32
    %455 = vector.broadcast %cst_91 : f32 to vector<1x256xf32>
    %456 = arith.maximumf %454, %455 : vector<1x256xf32>
    %457 = vector.broadcast %23 : f32 to vector<1x256xf32>
    %458 = arith.mulf %378, %457 : vector<1x256xf32>
    %459 = vector.broadcast %24 : f32 to vector<1x256xf32>
    %460 = arith.mulf %379, %459 : vector<1x256xf32>
    %461 = arith.addf %458, %460 : vector<1x256xf32>
    %462 = vector.broadcast %25 : f32 to vector<1x256xf32>
    %463 = arith.mulf %380, %462 : vector<1x256xf32>
    %464 = arith.addf %461, %463 : vector<1x256xf32>
    %465 = vector.broadcast %26 : f32 to vector<1x256xf32>
    %466 = arith.mulf %381, %465 : vector<1x256xf32>
    %467 = arith.addf %464, %466 : vector<1x256xf32>
    %468 = vector.broadcast %36 : f32 to vector<1x256xf32>
    %469 = arith.addf %467, %468 : vector<1x256xf32>
    %cst_92 = arith.constant 0.000000e+00 : f32
    %470 = vector.broadcast %cst_92 : f32 to vector<1x256xf32>
    %471 = arith.maximumf %469, %470 : vector<1x256xf32>
    %472 = vector.broadcast %27 : f32 to vector<1x256xf32>
    %473 = arith.mulf %378, %472 : vector<1x256xf32>
    %474 = vector.broadcast %28 : f32 to vector<1x256xf32>
    %475 = arith.mulf %379, %474 : vector<1x256xf32>
    %476 = arith.addf %473, %475 : vector<1x256xf32>
    %477 = vector.broadcast %29 : f32 to vector<1x256xf32>
    %478 = arith.mulf %380, %477 : vector<1x256xf32>
    %479 = arith.addf %476, %478 : vector<1x256xf32>
    %480 = vector.broadcast %30 : f32 to vector<1x256xf32>
    %481 = arith.mulf %381, %480 : vector<1x256xf32>
    %482 = arith.addf %479, %481 : vector<1x256xf32>
    %483 = vector.broadcast %37 : f32 to vector<1x256xf32>
    %484 = arith.addf %482, %483 : vector<1x256xf32>
    %cst_93 = arith.constant 0.000000e+00 : f32
    %485 = vector.broadcast %cst_93 : f32 to vector<1x256xf32>
    %486 = arith.maximumf %484, %485 : vector<1x256xf32>
    %487 = vector.broadcast %31 : f32 to vector<1x256xf32>
    %488 = arith.mulf %378, %487 : vector<1x256xf32>
    %489 = vector.broadcast %32 : f32 to vector<1x256xf32>
    %490 = arith.mulf %379, %489 : vector<1x256xf32>
    %491 = arith.addf %488, %490 : vector<1x256xf32>
    %492 = vector.broadcast %33 : f32 to vector<1x256xf32>
    %493 = arith.mulf %380, %492 : vector<1x256xf32>
    %494 = arith.addf %491, %493 : vector<1x256xf32>
    %495 = vector.broadcast %34 : f32 to vector<1x256xf32>
    %496 = arith.mulf %381, %495 : vector<1x256xf32>
    %497 = arith.addf %494, %496 : vector<1x256xf32>
    %498 = vector.broadcast %38 : f32 to vector<1x256xf32>
    %499 = arith.addf %497, %498 : vector<1x256xf32>
    %cst_94 = arith.constant 0.000000e+00 : f32
    %500 = vector.broadcast %cst_94 : f32 to vector<1x256xf32>
    %501 = arith.maximumf %499, %500 : vector<1x256xf32>
    %502 = tpu.concatenate %396, %411, %426, %441, %456, %471, %486, %501 in 0 : vector<1x256xf32>, vector<1x256xf32>, vector<1x256xf32>, vector<1x256xf32>, vector<1x256xf32>, vector<1x256xf32>, vector<1x256xf32>, vector<1x256xf32> -> vector<8x256xf32>
    %c0_95 = arith.constant 0 : index
    %c0_96 = arith.constant 0 : index
    %503 = vector.load %arg5[%c0_95, %c0_96] : memref<8x256xf32, #tpu.memory_space<vmem>>, vector<8x256xf32>
    tpu.vector_store %arg5[%c0_95, %c0_96], %502 {strides = array<i32>} : memref<8x256xf32, #tpu.memory_space<vmem>>, vector<8x256xf32>,
    return
  }
  func.func @transform_0(%arg0: i32) -> (i32, i32) {
    %c0_i32 = arith.constant 0 : i32
    %c0_i32_0 = arith.constant 0 : i32
    return %arg0, %c0_i32 : i32, i32
  }
  func.func @transform_1(%arg0: i32) -> (i32, i32, i32) {
    %c0_i32 = arith.constant 0 : i32
    %c0_i32_0 = arith.constant 0 : i32
    %c0_i32_1 = arith.constant 0 : i32
    %c0_i32_2 = arith.constant 0 : i32
    return %c0_i32, %c0_i32_0, %c0_i32_1 : i32, i32, i32
  }
  func.func @transform_2(%arg0: i32) -> (i32, i32) {
    %c0_i32 = arith.constant 0 : i32
    %c0_i32_0 = arith.constant 0 : i32
    %c0_i32_1 = arith.constant 0 : i32
    return %c0_i32, %c0_i32_0 : i32, i32
  }
  func.func @transform_3(%arg0: i32) -> i32 {
    %c0_i32 = arith.constant 0 : i32
    %c0_i32_0 = arith.constant 0 : i32
    return %c0_i32 : i32
  }
  func.func @transform_4(%arg0: i32) -> (i32, i32) {
    %c0_i32 = arith.constant 0 : i32
    %c0_i32_0 = arith.constant 0 : i32
    return %arg0, %c0_i32 : i32, i32
  }
}

</mosaic_0001>

<bundles_post_ra>
// kernel: tpu_custom_call.1
= control target key start
LH: loop header
LB: loop body
LE: loop exit
PB: predicated region body
PF: predicated region fallthrough
CT: control target
= control target key end

     0   :  { %9 = vsyncpa [#allocation3], 0  ;;  %s1779_s0 = inlined_call_operand.hbm [shape: f32[8,256], index: 0, kind: input, shape index: {}]   ;;  %s1780_s1 = inlined_call_operand.hbm [shape: f32[9,8,256], index: 1, kind: input, shape index: {}]   ;;  %s1781_s2 = inlined_call_operand.vmem [shape: f32[4,4], index: 2, kind: input, shape index: {}]   ;;  %s1782_s3 = inlined_call_operand.vmem [shape: f32[4], index: 3, kind: input, shape index: {}]   ;;  %s1783_s4 = inlined_call_operand.hbm [shape: f32[8,256], index: 4, kind: output, shape index: {}]  }
   0x1   :  { %10 = vsyncpa [#allocation7], 0 }
   0x2   :  { %11 = vsyncpa [#allocation5], 0 }
   0x3   :  { %12 = vsyncpa [#allocation10], 0 }
   0x4   :  { %13 = vsyncpa [#allocation4], 0  ;;  %s1084_s15 = smov [#allocation2]   ;;  %s1085_s17 = smov [#allocation6]  }
   0x5   :  { %s20_s16 = sshll.u32 %s1084_s15, 4  ;;  %s29_s18 = sshll.u32 %s1085_s17, 4  ;;  %s21_s16 = int_to_ptr.vmem [resolvable:$true] %s20_s16  ;;  %s1123_s18 = int_to_ptr.vmem [resolvable:$true] %s29_s18 }
   0x6   :  { %s984_s21 = scalar_lea.hbm %s1779_s0, 256 }
   0x7   :  { %p985_p0 = scmp.ne.s32.totalorder %s1779_s0, %s984_s21  ;;  %p988_p1 = scmp.lt.u32.totalorder %s984_s21, %s1779_s0 }
   0x9   :  { %p990_p2 = pnand %p988_p1, %p985_p0 }
   0xb   :  { %993 = shalt.err (!%p990_p2)
}
   0xc   :  { %s994_s26 = scalar_lea.vmem %s21_s16, 256  ;;  %p999_p4 = scmp.lt.s32.totalorder %s21_s16, %s21_s16 }
   0xd   :  { %p995_p3 = scmp.ne.s32.totalorder %s21_s16, %s994_s26  ;;  %p1000_p5 = scmp.lt.s32.totalorder %s994_s26, %s994_s26 }
   0xf   :  { %p1001_p6 = por %p1000_p5, %p999_p4 }
  0x11   :  { %p1002_p7 = pnand %p1001_p6, %p995_p3 }
  0x13   :  { %1005 = shalt.err (!%p1002_p7)
}
  0x14   :  { %23 = dma.hbm_to_vmem [thread:$0]  %s1779_s0, 256, %s21_s16, [#allocation3]  }
  0x15   :  { %s1006_s5 = scalar_lea.hbm %s1780_s1, 2304 }
  0x16   :  { %p1007_p8 = scmp.ne.s32.totalorder %s1780_s1, %s1006_s5  ;;  %p1010_p9 = scmp.lt.u32.totalorder %s1006_s5, %s1780_s1 }
  0x18   :  { %p1012_p10 = pnand %p1010_p9, %p1007_p8 }
  0x1a   :  { %1015 = shalt.err (!%p1012_p10)
}
  0x1b   :  { %s1016_s10 = scalar_lea.vmem %s1123_s18, 2304  ;;  %p1021_p12 = scmp.lt.s32.totalorder %s1123_s18, %s1123_s18 }
  0x1c   :  { %p1017_p11 = scmp.ne.s32.totalorder %s1123_s18, %s1016_s10  ;;  %p1022_p13 = scmp.lt.s32.totalorder %s1016_s10, %s1016_s10 }
  0x1e   :  { %p1023_p0 = por %p1022_p13, %p1021_p12 }
  0x20   :  { %p1024_p1 = pnand %p1023_p0, %p1017_p11 }
  0x22   :  { %1027 = shalt.err (!%p1024_p1)
}
  0x23   :  { %s1086_s0 = smov 256   ;;  %s1087_s11 = smov 16  }
  0x24   :  { %35 = dma.hbm_to_vmem [thread:$0]  %s1780_s1, 2304, %s1123_s18, [#allocation7], %s1086_s0, %s1086_s0, %s1087_s11  }
  0x25   :  { %s42_s16 = sshll.u32 %s1781_s2, 4  ;;  %s52_s20 = sshll.u32 %s1782_s3, 4  ;;  %s43_s16 = int_to_ptr.vmem [resolvable:$true] %s42_s16  ;;  %s53_s20 = int_to_ptr.vmem [resolvable:$true] %s52_s20 }
  0x26   :  { %s1028_s21 = scalar_lea.vmem %s43_s16, 64  ;;  %p1033_p3 = scmp.lt.s32.totalorder %s43_s16, %s43_s16 }
  0x27   :  { %p1029_p2 = scmp.ne.s32.totalorder %s43_s16, %s1028_s21  ;;  %p1034_p4 = scmp.lt.s32.totalorder %s1028_s21, %s1028_s21 }
  0x29   :  { %p1035_p5 = por %p1034_p4, %p1033_p3 }
  0x2b   :  { %p1036_p6 = pnand %p1035_p5, %p1029_p2 }
  0x2d   :  { %1039 = shalt.err (!%p1036_p6)
}
  0x2e   :  { %s1088_s22 = smov [#allocation8]   ;;  %s1040_s1 = scalar_lea.vmem %s53_s20, 16 }
  0x2f   :  { %45 = dma.vmem_to_smem %s43_s16, 64, %s1088_s22, [#allocation5]  }
  0x30   :  { %p1041_p7 = scmp.ne.s32.totalorder %s53_s20, %s1040_s1  ;;  %p1045_p8 = scmp.lt.s32.totalorder %s53_s20, %s53_s20 }
  0x31   :  { %p1046_p9 = scmp.lt.s32.totalorder %s1040_s1, %s1040_s1 }
  0x33   :  { %p1047_p10 = por %p1046_p9, %p1045_p8 }
  0x35   :  { %p1048_p11 = pnand %p1047_p10, %p1041_p7 }
  0x37   :  { %1051 = shalt.err (!%p1048_p11)
}
  0x38   :  { %s1089_s2 = smov [#allocation9]  }
  0x39   :  { %55 = dma.vmem_to_smem %s53_s20, 16, %s1089_s2, [#allocation10]  }
  0x3a   :  { %1074 = dma.done.wait [#allocation3], 256  }
  0x3b   :  { %1075 = vsyncadd [#allocation3], 4294967040 }
  0x3c   :  { %1076 = dma.done.wait [#allocation7], 2304  }
  0x3d   :  { %1077 = vsyncadd [#allocation7], 4294964992 }
  0x3e   :  { %1078 = dma.done.wait [#allocation5], 64  }
  0x3f   :  { %1079 = vsyncadd [#allocation5], 4294967232 }
  0x40   :  { %1080 = dma.done.wait [#allocation10], 16  }
  0x41   :  { %1081 = vsyncadd [#allocation10], 4294967280 }
  0x42   :  { %68 = sfence }
  0x43   :  { %v1161_v0 = vld [vmem:[#allocation2] sm:$0xff]  ;;  %s1090_s3 = smov 17   ;;  %v1167_v1 = vld [vmem:[#allocation2 + $0x8] sm:$0xff]  ;;  %s1091_s18 = smov 1   ;;  %v121_v8 = vlaneseq  ;;  %v1209_v12 = vld [vmem:[#allocation6 + $0x40] sm:$0xff]  ;;  %vm391_vm8 = vcmask 1040384  }
  0x44   :  { %128 = vrot.lane.b32.xlu1 %v1161_v0, %s1087_s11  ;;  %117 = vrot.lane.b32.xlu0 %v1161_v0, %s1090_s3  ;;  %s1092_s23 = smov 15   ;;  %s1093_s24 = smov 127   ;;  %v1215_v13 = vld [vmem:[#allocation6 + $0x48] sm:$0xff]  ;;  %v1222_v16 = vmul.f32 %v1209_v12, %v1161_v0  ;;  %v1224_v17 = vld [vmem:[#allocation6 + $0x38] sm:$0xff]  ;;  %v1252_v30 = vld [vmem:[#allocation6 + $0x30] sm:$0xff]  ;;  %vm394_vm9 = vcmask 1041408  }
  0x45   :  { %s1094_s25 = smov 113   ;;  %s1095_s26 = smov 112   ;;  %v1203_v11 = vand.u32 127, %v121_v8  ;;  %v160_v18 = vmul.f32 %v1215_v13, %v1167_v1  ;;  %v1237_v21 = vld [vmem:[#allocation6 + $0x18] sm:$0xff]  ;;  %v1248_v28 = vld [vmem:[#allocation6 + $0x8] sm:$0xff]  ;;  %v1261_v35 = vld [vmem:[#allocation6 + $0x10] sm:$0xff] }
  0x46   :  { %s1096_s27 = smov 111   ;;  %s97_s28 = sld [smem:[#allocation8]]  ;;  %1800 = vst [vmem:[#allocation17_spill] sm:$0xff] %v1237_v21  ;;  %v1257_v33 = vld [vmem:[#allocation6 + $0x58] sm:$0xff]  ;;  %v1263_v36 = vld [vmem:[#allocation6] sm:$0xff]  ;;  %v1284_v44 = vld [vmem:[#allocation6 + $0x28] sm:$0xff] }
  0x47   :  { %s1197_s29 = sld [smem:[#allocation8 + $0x1]]  ;;  %s953_s30 = sld [smem:[#allocation8 + $0x2]]  ;;  %vm154_vm0 = vcmp.lt.s32.totalorder %v1203_v11, 1  ;;  %vm132_vm1 = vcmp.lt.s32.totalorder %v1203_v11, 16  ;;  %vm123_vm2 = vcmp.lt.s32.totalorder %v1203_v11, 17  ;;  %vm143_vm3 = vcmp.lt.s32.totalorder %v1203_v11, 15 }
  0x48   :  { %130 = vrot.lane.b32.xlu1 %v1167_v1, %s1087_s11  ;;  %119 = vrot.lane.b32.xlu0 %v1167_v1, %s1090_s3  ;;  %s954_s5 = sld [smem:[#allocation8 + $0x3]]  ;;  %s1205_s6 = sld [smem:[#allocation8 + $0x80]]  ;;  %vm167_vm4 = vcmp.lt.s32.totalorder %v1203_v11, 127  ;;  %vm178_vm5 = vcmp.lt.s32.totalorder %v1203_v11, 113  ;;  %vm187_vm6 = vcmp.lt.s32.totalorder %v1203_v11, 112  ;;  %vm198_vm7 = vcmp.lt.s32.totalorder %v1203_v11, 111 }
  0x49   :  { %s1207_s7 = sld [smem:[#allocation8 + $0x81]]  ;;  %s1211_s8 = sld [smem:[#allocation8 + $0x82]]  ;;  %1801 = vst [vmem:[#allocation18_spill] sm:$0xff] %v1257_v33  ;;  %1802 = vst [vmem:[#allocation19_spill] sm:$0xff] %v1284_v44  ;;  %v1290_v46 = vld [vmem:[#allocation6 + $0x78] sm:$0xff]  ;;  %v1298_v49 = vld [vmem:[#allocation6 + $0x50] sm:$0xff] }
  0x4a   :  { %s1213_s9 = sld [smem:[#allocation8 + $0x83]]  ;;  %s1265_s10 = sld [smem:[#allocation8 + $0x100]]  ;;  %1803 = vst [vmem:[#allocation20_spill] sm:$0xff] %v1290_v46  ;;  %1804 = vst [vmem:[#allocation21_spill] sm:$0xff] %v1298_v49  ;;  %v1303_v53 = vld [vmem:[#allocation6 + $0x70] sm:$0xff]  ;;  %v1309_v56 = vld [vmem:[#allocation6 + $0x68] sm:$0xff] }
  0x4b   :  { %s1292_s0 = sld [smem:[#allocation8 + $0x101]]  ;;  %s1294_s12 = sld [smem:[#allocation8 + $0x102]]  ;;  %1805 = vst [vmem:[#allocation22_spill] sm:$0xff] %v1303_v53  ;;  %1806 = vst [vmem:[#allocation23_spill] sm:$0xff] %v1309_v56  ;;  %v1321_v60 = vld [vmem:[#allocation6 + $0x20] sm:$0xff]  ;;  %vm397_vm10 = vcmask 1042432  }
  0x4c   :  { %152 = vrot.lane.b32.xlu1 %v1167_v1, %s1091_s18  ;;  %150 = vrot.lane.b32.xlu0 %v1161_v0, %s1091_s18  ;;  %v1235_v20 = vstv %s97_s28  ;;  %s1305_s13 = sld [smem:[#allocation8 + $0x103]]  ;;  %s1307_s14 = sld [smem:[#allocation8 + $0x180]]  ;;  %1807 = vst [vmem:[#allocation24_spill] sm:$0xff] %v1321_v60  ;;  %v1328_v63 = vld [vmem:[#allocation6 + $0x60] sm:$0xff]  ;;  %vm400_vm11 = vcmask 1043456   ;;  %vm403_vm12 = vcmask 1044480  }
  0x4d   :  { %v1242_v25 = vstv %s1197_s29  ;;  %v1244_v26 = vstv %s953_s30  ;;  %s1317_s15 = sld [smem:[#allocation8 + $0x181]]  ;;  %s1319_s16 = sld [smem:[#allocation8 + $0x182]]  ;;  %1808 = vst [vmem:[#allocation25_spill] sm:$0xff] %v1328_v63  ;;  %v1341_v8 = vld [vmem:[#allocation6 + $0x80] sm:$0xff]  ;;  %vm406_vm13 = vcmask 1045504   ;;  %vm409_vm14 = vcmask 1046528  }
  0x4e   :  { %v1246_v27 = vstv %s954_s5  ;;  %v1268_v37 = vstv %s1205_s6  ;;  %s1333_s17 = sld [smem:[#allocation8 + $0x183]]  ;;  %s1335_s19 = sld [smem:[#allocation9]]  ;;  %1809 = vst [vmem:[#allocation26_spill] sm:$0xff] %v1341_v8 }
  0x4f   :  { %v1271_v38 = vstv %s1207_s7  ;;  %v1274_v39 = vstv %s1211_s8  ;;  %s1345_s20 = sld [smem:[#allocation9 + $0x1]]  ;;  %s1347_s21 = sld [smem:[#allocation9 + $0x2]] }
  0x50   :  { %141 = vrot.lane.b32.xlu1 %v1167_v1, %s1092_s23  ;;  %139 = vrot.lane.b32.xlu0 %v1161_v0, %s1092_s23  ;;  %v1277_v40 = vstv %s1213_s9  ;;  %s1351_s22 = sld [smem:[#allocation9 + $0x3]] }
  0x54   :  { %165 = vrot.lane.b32.xlu1 %v1167_v1, %s1093_s24  ;;  %163 = vrot.lane.b32.xlu0 %v1161_v0, %s1093_s24 }
  0x58   :  { %176 = vrot.lane.b32.xlu1 %v1167_v1, %s1094_s25  ;;  %174 = vrot.lane.b32.xlu0 %v1161_v0, %s1094_s25 }
  0x5c   :  { %185 = vrot.lane.b32.xlu1 %v1167_v1, %s1095_s26  ;;  %183 = vrot.lane.b32.xlu0 %v1161_v0, %s1095_s26 }
  0x60   :  { %196 = vrot.lane.b32.xlu1 %v1167_v1, %s1096_s27  ;;  %194 = vrot.lane.b32.xlu0 %v1161_v0, %s1096_s27 }
  0xb6   :  { %v129_v2 = vpop.permute.xlu1 %128  ;;  %v118_v3 = vpop.permute.xlu0 %117 }
  0xba   :  { %v131_v4 = vpop.permute.xlu1 %130  ;;  %v120_v5 = vpop.permute.xlu0 %119 }
  0xbb   :  { %v133_v22 = vsel %vm132_vm1, %v129_v2, %v131_v4  ;;  %v124_v29 = vsel %vm123_vm2, %v118_v3, %v120_v5  ;;  %v134_v41 = vsel %vm132_vm1, %v131_v4, %v129_v2  ;;  %v125_v43 = vsel %vm123_vm2, %v120_v5, %v118_v3 }
  0xbc   :  { %v136_v42 = vmul.f32 %v133_v22, %v1237_v21  ;;  %v127_v47 = vmul.f32 %v124_v29, %v1248_v28  ;;  %v135_v4 = vmul.f32 %v134_v41, %v1261_v35  ;;  %v126_v5 = vmul.f32 %v125_v43, %v1263_v36 }
  0xbe   :  { %v153_v6 = vpop.permute.xlu1 %152  ;;  %v151_v7 = vpop.permute.xlu0 %150 }
  0xbf   :  { %v155_v19 = vsel %vm154_vm0, %v151_v7, %v153_v6  ;;  %v156_v31 = vsel %vm154_vm0, %v153_v6, %v151_v7 }
  0xc0   :  { %v158_v32 = vmul.f32 %v155_v19, %v1224_v17  ;;  %v157_v48 = vmul.f32 %v156_v31, %v1252_v30 }
  0xc2   :  { %v1199_v9 = vpop.permute.xlu1 %141  ;;  %v1201_v10 = vpop.permute.xlu0 %139  ;;  %v162_v55 = vadd.f32 %v160_v18, %v158_v32 }
  0xc3   :  { %v144_v45 = vsel %vm143_vm3, %v1201_v10, %v1199_v9  ;;  %v145_v61 = vsel %vm143_vm3, %v1199_v9, %v1201_v10  ;;  %v1343_v9 = vld [vmem:[#allocation6 + $0x88] sm:$0xff]  ;;  %v138_v10 = vadd.f32 %v136_v42, %v127_v47  ;;  %v137_v42 = vadd.f32 %v135_v4, %v126_v5 }
  0xc4   :  { %v147_v62 = vmul.f32 %v144_v45, %v1284_v44  ;;  %1810 = vst [vmem:[#allocation27_spill] sm:$0xff] %v1343_v9  ;;  %v1362_v47 = vstv %s1265_s10  ;;  %v1386_v4 = vstv %s1335_s19  ;;  %v1389_v5 = vstv %s1345_s20 }
  0xc6   :  { %v166_v14 = vpop.permute.xlu1 %165  ;;  %v164_v15 = vpop.permute.xlu0 %163  ;;  %v149_v31 = vadd.f32 %v147_v62, %v138_v10  ;;  %v1380_v62 = vstv %s1319_s16 }
  0xc7   :  { %v169_v34 = vsel %vm167_vm4, %v166_v14, %v164_v15  ;;  %v168_v50 = vsel %vm167_vm4, %v164_v15, %v166_v14  ;;  %v161_v14 = vadd.f32 %v1222_v16, %v157_v48 }
  0xc8   :  { %v171_v51 = vmul.f32 %v169_v34, %v1257_v33  ;;  %v170_v6 = vmul.f32 %v168_v50, %v1298_v49 }
  0xca   :  { %v177_v23 = vpop.permute.xlu1 %176  ;;  %v175_v24 = vpop.permute.xlu0 %174  ;;  %v173_v15 = vadd.f32 %v171_v51, %v162_v55  ;;  %v172_v43 = vadd.f32 %v170_v6, %v161_v14  ;;  %v1365_v51 = vstv %s1292_s0  ;;  %v1392_v6 = vstv %s1347_s21 }
  0xcb   :  { %v180_v57 = vsel %vm178_vm5, %v177_v23, %v175_v24  ;;  %v179_v2 = vsel %vm178_vm5, %v175_v24, %v177_v23  ;;  %v146_v23 = vmul.f32 %v145_v61, %v1321_v60  ;;  %v1377_v61 = vstv %s1317_s15 }
  0xcc   :  { %v182_v18 = vmul.f32 %v180_v57, %v1309_v56  ;;  %v181_v24 = vmul.f32 %v179_v2, %v1328_v63  ;;  %v206_v48 = vadd.f32 %v173_v15, %v149_v31  ;;  %v1371_v57 = vstv %s1305_s13 }
  0xcd   :  { %v1383_v2 = vstv %s1333_s17  ;;  %v1398_v15 = vstv %s1351_s22 }
  0xce   :  { %v186_v52 = vpop.permute.xlu1 %185  ;;  %v184_v54 = vpop.permute.xlu0 %183 }
  0xcf   :  { %v188_v58 = vsel %vm187_vm6, %v184_v54, %v186_v52  ;;  %v189_v59 = vsel %vm187_vm6, %v186_v52, %v184_v54  ;;  %v1368_v52 = vstv %s1294_s12  ;;  %v148_v54 = vadd.f32 %v146_v23, %v137_v42 }
  0xd0   :  { %v191_v3 = vmul.f32 %v189_v59, %v1290_v46  ;;  %v190_v7 = vmul.f32 %v188_v58, %v1303_v53  ;;  %v1374_v58 = vstv %s1307_s14 }
  0xd2   :  { %v197_v19 = vpop.permute.xlu1 %196  ;;  %v195_v22 = vpop.permute.xlu0 %194  ;;  %v193_v32 = vadd.f32 %v191_v3, %v182_v18  ;;  %v192_v45 = vadd.f32 %v190_v7, %v181_v24  ;;  %v205_v3 = vadd.f32 %v172_v43, %v148_v54 }
  0xd3   :  { %v199_v29 = vsel %vm198_vm7, %v195_v22, %v197_v19  ;;  %v200_v16 = vsel %vm198_vm7, %v197_v19, %v195_v22 }
  0xd4   :  { %v201_v34 = vmul.f32 %v199_v29, %v1341_v8  ;;  %v202_v41 = vmul.f32 %v200_v16, %v1343_v9 }
  0xd6   :  { %v204_v50 = vadd.f32 %v202_v41, %v193_v32  ;;  %v203_v55 = vadd.f32 %v201_v34, %v192_v45 }
  0xd8   :  { %v208_v59 = vadd.f32 %v206_v48, %v204_v50  ;;  %v1400_v18 = vadd.f32 %v205_v3, %v203_v55 }
  0xda   :  { %v214_v7 = vmul.f32 %v1242_v25, %v208_v59  ;;  %v225_v10 = vmul.f32 %v1244_v26, %v208_v59  ;;  %v236_v14 = vmul.f32 %v1246_v27, %v208_v59  ;;  %v211_v19 = vmul.f32 %v1235_v20, %v208_v59 }
  0xdb   :  { %v255_v22 = vmul.f32 %v1271_v38, %v208_v59  ;;  %v266_v23 = vmul.f32 %v1274_v39, %v208_v59  ;;  %v252_v16 = vmul.f32 %v1268_v37, %v208_v59  ;;  %v277_v31 = vmul.f32 %v1277_v40, %v208_v59 }
  0xdc   :  { %v218_v24 = vrot.slane %v214_v7, 1  ;;  %v229_v29 = vrot.slane %v225_v10, 2  ;;  %v240_v32 = vrot.slane %v236_v14, 3  ;;  %v293_v41 = vmul.f32 %v1362_v47, %v208_v59 }
  0xdd   :  { %v259_v34 = vrot.slane %v255_v22, 1  ;;  %v296_v42 = vmul.f32 %v1365_v51, %v208_v59  ;;  %v270_v45 = vrot.slane %v266_v23, 2  ;;  %v307_v48 = vmul.f32 %v1368_v52, %v208_v59 }
  0xde   :  { %v222_v43 = vadd.f32 %v218_v24, %v211_v19  ;;  %v318_v50 = vmul.f32 %v1371_v57, %v208_v59  ;;  %v337_v3 = vmul.f32 %v1377_v61, %v208_v59  ;;  %v348_v7 = vmul.f32 %v1380_v62, %v208_v59 }
  0xdf   :  { %v263_v54 = vadd.f32 %v259_v34, %v252_v16  ;;  %v300_v55 = vrot.slane %v296_v42, 1  ;;  %v281_v9 = vrot.slane %v277_v31, 3  ;;  %v311_v14 = vrot.slane %v307_v48, 2 }
  0xe0   :  { %v233_v10 = vadd.f32 %v229_v29, %v222_v43  ;;  %v334_v22 = vmul.f32 %v1374_v58, %v208_v59  ;;  %v341_v19 = vrot.slane %v337_v3, 1  ;;  %v359_v23 = vmul.f32 %v1383_v2, %v208_v59 }
  0xe1   :  { %v274_v8 = vadd.f32 %v270_v45, %v263_v54  ;;  %v304_v63 = vadd.f32 %v300_v55, %v293_v41  ;;  %v322_v60 = vrot.slane %v318_v50, 3  ;;  %v352_v56 = vrot.slane %v348_v7, 2 }
  0xe2   :  { %v244_v24 = vadd.f32 %v240_v32, %v233_v10  ;;  %v213_v16 = vmul.f32 %v1242_v25, %v1400_v18  ;;  %v345_v29 = vadd.f32 %v341_v19, %v334_v22  ;;  %v224_v31 = vmul.f32 %v1244_v26, %v1400_v18 }
  0xe3   :  { %v285_v34 = vadd.f32 %v281_v9, %v274_v8  ;;  %v315_v42 = vadd.f32 %v311_v14, %v304_v63  ;;  %v210_v41 = vmul.f32 %v1235_v20, %v1400_v18  ;;  %v363_v50 = vrot.slane %v359_v23, 3 }
  0xe4   :  { %v247_v43 = vadd.f32 %v1386_v4, %v244_v24  ;;  %v217_v59 = vrot.slane %v213_v16, 1  ;;  %v356_v48 = vadd.f32 %v352_v56, %v345_v29  ;;  %v228_v63 = vrot.slane %v224_v31, 2 }
  0xe5   :  { %v288_v32 = vadd.f32 %v1389_v5, %v285_v34  ;;  %v326_v45 = vadd.f32 %v322_v60, %v315_v42  ;;  %v235_v9 = vmul.f32 %v1246_v27, %v1400_v18  ;;  %v254_v54 = vmul.f32 %v1271_v38, %v1400_v18 }
  0xe6   :  { %v221_v8 = vadd.f32 %v217_v59, %v210_v41  ;;  %v367_v7 = vadd.f32 %v363_v50, %v356_v48  ;;  %v265_v10 = vmul.f32 %v1274_v39, %v1400_v18  ;;  %v249_v60 = vmax.f32 %v247_v43, 0.0 }
  0xe7   :  { %v290_v55 = vmax.f32 %v288_v32, 0.0  ;;  %v329_v3 = vadd.f32 %v1392_v6, %v326_v45  ;;  %v251_v56 = vmul.f32 %v1268_v37, %v1400_v18  ;;  %v258_v14 = vrot.slane %v254_v54, 1 }
  0xe8   :  { %v276_v22 = vmul.f32 %v1277_v40, %v1400_v18  ;;  %v370_v23 = vadd.f32 %v1398_v15, %v367_v7  ;;  %v232_v16 = vadd.f32 %v228_v63, %v221_v8  ;;  %v269_v42 = vrot.slane %v265_v10, 2 }
  0xe9   :  { %v331_v19 = vmax.f32 %v329_v3, 0.0  ;;  %v376_v24 = vrot.slane %v290_v55, 7  ;;  %v262_v34 = vadd.f32 %v258_v14, %v251_v56  ;;  %v292_v29 = vmul.f32 %v1362_v47, %v1400_v18 }
  0xea   :  { %v295_v31 = vmul.f32 %v1365_v51, %v1400_v18  ;;  %v372_v43 = vmax.f32 %v370_v23, 0.0  ;;  %v306_v32 = vmul.f32 %v1368_v52, %v1400_v18  ;;  %v280_v48 = vrot.slane %v276_v22, 3 }
  0xeb   :  { %v382_v41 = vrot.slane %v331_v19, 6  ;;  %v393_v59 = vsel %vm391_vm8, %v249_v60, %v376_v24  ;;  %v273_v45 = vadd.f32 %v269_v42, %v262_v34  ;;  %v317_v8 = vmul.f32 %v1371_v57, %v1400_v18 }
  0xec   :  { %v299_v50 = vrot.slane %v295_v31, 1  ;;  %v388_v63 = vrot.slane %v372_v43, 5  ;;  %v239_v55 = vrot.slane %v235_v9, 3  ;;  %v310_v10 = vrot.slane %v306_v32, 2 }
  0xed   :  { %v396_v54 = vsel %vm394_vm9, %v393_v59, %v382_v41  ;;  %v284_v3 = vadd.f32 %v280_v48, %v273_v45  ;;  %v336_v19 = vmul.f32 %v1377_v61, %v1400_v18  ;;  %v347_v22 = vmul.f32 %v1380_v62, %v1400_v18 }
  0xee   :  { %v303_v7 = vadd.f32 %v299_v50, %v292_v29  ;;  %v399_v56 = vsel %vm397_vm10, %v396_v54, %v388_v63  ;;  %v243_v14 = vadd.f32 %v239_v55, %v232_v16  ;;  %v321_v31 = vrot.slane %v317_v8, 3 }
  0xef   :  { %v402_v23 = vsel %vm400_vm11, %v399_v56, %v249_v60  ;;  %v287_v34 = vadd.f32 %v1389_v5, %v284_v3  ;;  %v333_v29 = vmul.f32 %v1374_v58, %v1400_v18  ;;  %v340_v43 = vrot.slane %v336_v19, 1 }
  0xf0   :  { %v314_v42 = vadd.f32 %v310_v10, %v303_v7  ;;  %v405_v9 = vsel %vm403_vm12, %v402_v23, %v376_v24  ;;  %v358_v16 = vmul.f32 %v1383_v2, %v1400_v18  ;;  %v246_v60 = vadd.f32 %v1386_v4, %v243_v14 }
  0xf1   :  { %v408_v59 = vsel %vm406_vm13, %v405_v9, %v382_v41  ;;  %v289_v32 = vmax.f32 %v287_v34, 0.0  ;;  %v344_v50 = vadd.f32 %v340_v43, %v333_v29  ;;  %v351_v54 = vrot.slane %v347_v22, 2 }
  0xf2   :  { %v325_v45 = vadd.f32 %v321_v31, %v314_v42  ;;  %v411_v48 = vsel %vm409_vm14, %v408_v59, %v388_v63  ;;  %v362_v3 = vrot.slane %v358_v16, 3  ;;  %v248_v10 = vmax.f32 %v246_v60, 0.0 }
  0xf3   :  { %v413_v8 = vadd.f32 %v411_v48, %v1167_v1  ;;  %v355_v55 = vadd.f32 %v351_v54, %v344_v50  ;;  %v375_v7 = vrot.slane %v289_v32, 7 }
  0xf4   :  { %v328_v24 = vadd.f32 %v1392_v6, %v325_v45 }
  0xf5   :  { %416 = vrot.lane.b32.xlu1 %v413_v8, %s1090_s3  ;;  %v366_v41 = vadd.f32 %v362_v3, %v355_v55  ;;  %v392_v63 = vsel %vm391_vm8, %v248_v10, %v375_v7 }
  0xf6   :  { %v330_v18 = vmax.f32 %v328_v24, 0.0 }
  0xf7   :  { %v369_v19 = vadd.f32 %v1398_v15, %v366_v41 }
  0xf8   :  { %v381_v56 = vrot.slane %v330_v18, 6 }
  0xf9   :  { %424 = vrot.lane.b32.xlu1 %v413_v8, %s1087_s11  ;;  %v371_v14 = vmax.f32 %v369_v19, 0.0 }
  0xfa   :  { %v395_v22 = vsel %vm394_vm9, %v392_v63, %v381_v56 }
  0xfb   :  { %v387_v23 = vrot.slane %v371_v14, 5 }
  0xfd   :  { %444 = vrot.lane.b32.xlu1 %v413_v8, %s1091_s18  ;;  %v398_v34 = vsel %vm397_vm10, %v395_v22, %v387_v23  ;;  %v451_v22 = vmul.f32 %v413_v8, %v1215_v13 }
  0xfe   :  { %v401_v42 = vsel %vm400_vm11, %v398_v34, %v248_v10 }
  0xff   :  { %v404_v31 = vsel %vm403_vm12, %v401_v42, %v375_v7 }
 0x100   :  { %v407_v9 = vsel %vm406_vm13, %v404_v31, %v381_v56 }
 0x101   :  { %434 = vrot.lane.b32.xlu1 %v413_v8, %s1092_s23  ;;  %v410_v29 = vsel %vm409_vm14, %v407_v9, %v387_v23 }
 0x102   :  { %v412_v43 = vadd.f32 %v410_v29, %v1161_v0 }
 0x104   :  { %414 = vrot.lane.b32.xlu0 %v412_v43, %s1090_s3  ;;  %v450_v23 = vmul.f32 %v412_v43, %v1209_v12 }
 0x105   :  { %456 = vrot.lane.b32.xlu1 %v413_v8, %s1093_s24 }
 0x108   :  { %422 = vrot.lane.b32.xlu0 %v412_v43, %s1087_s11 }
 0x109   :  { %466 = vrot.lane.b32.xlu1 %v413_v8, %s1094_s25 }
 0x10c   :  { %442 = vrot.lane.b32.xlu0 %v412_v43, %s1091_s18 }
 0x10d   :  { %474 = vrot.lane.b32.xlu1 %v413_v8, %s1095_s26 }
 0x110   :  { %432 = vrot.lane.b32.xlu0 %v412_v43, %s1092_s23 }
 0x111   :  { %484 = vrot.lane.b32.xlu1 %v413_v8, %s1096_s27 }
 0x114   :  { %454 = vrot.lane.b32.xlu0 %v412_v43, %s1093_s24 }
 0x118   :  { %464 = vrot.lane.b32.xlu0 %v412_v43, %s1094_s25 }
 0x11c   :  { %472 = vrot.lane.b32.xlu0 %v412_v43, %s1095_s26 }
 0x120   :  { %482 = vrot.lane.b32.xlu0 %v412_v43, %s1096_s27 }
 0x167   :  { %v417_v16 = vpop.permute.xlu1 %416 }
 0x16b   :  { %v425_v59 = vpop.permute.xlu1 %424 }
 0x16f   :  { %v445_v32 = vpop.permute.xlu1 %444 }
 0x173   :  { %v435_v48 = vpop.permute.xlu1 %434 }
 0x176   :  { %v415_v45 = vpop.permute.xlu0 %414 }
 0x177   :  { %v457_v54 = vpop.permute.xlu1 %456  ;;  %v418_v18 = vsel %vm123_vm2, %v415_v45, %v417_v16  ;;  %v419_v34 = vsel %vm123_vm2, %v417_v16, %v415_v45 }
 0x178   :  { %v421_v42 = vmul.f32 %v418_v18, %v1248_v28 }
 0x17a   :  { %v423_v60 = vpop.permute.xlu0 %422 }
 0x17b   :  { %v467_v55 = vpop.permute.xlu1 %466  ;;  %v426_v56 = vsel %vm132_vm1, %v423_v60, %v425_v59  ;;  %v427_v31 = vsel %vm132_vm1, %v425_v59, %v423_v60 }
 0x17c   :  { %v429_v29 = vmul.f32 %v426_v56, %v1237_v21 }
 0x17e   :  { %v443_v50 = vpop.permute.xlu0 %442 }
 0x17f   :  { %v446_v7 = vsel %vm154_vm0, %v443_v50, %v445_v32  ;;  %v475_v41 = vpop.permute.xlu1 %474  ;;  %v447_v19 = vsel %vm154_vm0, %v445_v32, %v443_v50 }
 0x180   :  { %v449_v63 = vmul.f32 %v446_v7, %v1224_v17  ;;  %v448_v32 = vmul.f32 %v447_v19, %v1252_v30  ;;  %v420_v19 = vmul.f32 %v419_v34, %v1263_v36 }
 0x182   :  { %v433_v24 = vpop.permute.xlu0 %432  ;;  %v453_v7 = vadd.f32 %v451_v22, %v449_v63  ;;  %v428_v63 = vmul.f32 %v427_v31, %v1261_v35 }
 0x183   :  { %v436_v9 = vsel %vm143_vm3, %v433_v24, %v435_v48  ;;  %v437_v60 = vsel %vm143_vm3, %v435_v48, %v433_v24  ;;  %v485_v56 = vpop.permute.xlu1 %484  ;;  %v1811_v48 = vld [vmem:[#allocation23_spill] sm:$0xff] }
 0x184   :  { %v439_v18 = vmul.f32 %v436_v9, %v1284_v44  ;;  %v1812_v44 = vld [vmem:[#allocation24_spill] sm:$0xff] }
 0x185   :  { %v438_v21 = vmul.f32 %v437_v60, %v1812_v44 }
 0x186   :  { %v455_v3 = vpop.permute.xlu0 %454 }
 0x187   :  { %v459_v14 = vsel %vm167_vm4, %v457_v54, %v455_v3  ;;  %v458_v8 = vsel %vm167_vm4, %v455_v3, %v457_v54 }
 0x188   :  { %v461_v43 = vmul.f32 %v459_v14, %v1257_v33  ;;  %v460_v14 = vmul.f32 %v458_v8, %v1298_v49 }
 0x18a   :  { %v465_v10 = vpop.permute.xlu0 %464  ;;  %v463_v33 = vadd.f32 %v461_v43, %v453_v7 }
 0x18b   :  { %v469_v16 = vsel %vm178_vm5, %v467_v55, %v465_v10  ;;  %v468_v54 = vsel %vm178_vm5, %v465_v10, %v467_v55  ;;  %v1813_v55 = vld [vmem:[#allocation25_spill] sm:$0xff] }
 0x18c   :  { %v471_v24 = vmul.f32 %v469_v16, %v1811_v48  ;;  %v470_v10 = vmul.f32 %v468_v54, %v1813_v55 }
 0x18e   :  { %v473_v50 = vpop.permute.xlu0 %472 }
 0x18f   :  { %v476_v59 = vsel %vm187_vm6, %v473_v50, %v475_v41  ;;  %v477_v45 = vsel %vm187_vm6, %v475_v41, %v473_v50  ;;  %v431_v41 = vadd.f32 %v429_v29, %v421_v42  ;;  %v452_v50 = vadd.f32 %v450_v23, %v448_v32  ;;  %v1815_v42 = vld [vmem:[#allocation27_spill] sm:$0xff] }
 0x190   :  { %v479_v3 = vmul.f32 %v477_v45, %v1290_v46  ;;  %v478_v22 = vmul.f32 %v476_v59, %v1303_v53  ;;  %v1814_v46 = vld [vmem:[#allocation26_spill] sm:$0xff]  ;;  %v430_v29 = vadd.f32 %v428_v63, %v420_v19 }
 0x191   :  { %v441_v31 = vadd.f32 %v439_v18, %v431_v41  ;;  %v462_v32 = vadd.f32 %v460_v14, %v452_v50 }
 0x192   :  { %v483_v9 = vpop.permute.xlu0 %482  ;;  %v481_v8 = vadd.f32 %v479_v3, %v471_v24  ;;  %v480_v43 = vadd.f32 %v478_v22, %v470_v10  ;;  %v440_v60 = vadd.f32 %v438_v21, %v430_v29 }
 0x193   :  { %v486_v45 = vsel %vm198_vm7, %v483_v9, %v485_v56  ;;  %v487_v34 = vsel %vm198_vm7, %v485_v56, %v483_v9  ;;  %v493_v7 = vadd.f32 %v463_v33, %v441_v31 }
 0x194   :  { %v488_v59 = vmul.f32 %v486_v45, %v1814_v46  ;;  %v489_v23 = vmul.f32 %v487_v34, %v1815_v42  ;;  %v492_v55 = vadd.f32 %v462_v32, %v440_v60 }
 0x196   :  { %v491_v16 = vadd.f32 %v489_v23, %v481_v8  ;;  %v490_v48 = vadd.f32 %v488_v59, %v480_v43 }
 0x198   :  { %v495_v54 = vadd.f32 %v493_v7, %v491_v16  ;;  %v1540_v3 = vadd.f32 %v492_v55, %v490_v48 }
 0x19a   :  { %v499_v53 = vmul.f32 %v495_v54, %v1242_v25  ;;  %v509_v49 = vmul.f32 %v495_v54, %v1244_v26  ;;  %v519_v18 = vmul.f32 %v495_v54, %v1246_v27  ;;  %v497_v56 = vmul.f32 %v495_v54, %v1235_v20 }
 0x19b   :  { %v535_v19 = vmul.f32 %v495_v54, %v1271_v38  ;;  %v545_v63 = vmul.f32 %v495_v54, %v1274_v39  ;;  %v533_v21 = vmul.f32 %v495_v54, %v1268_v37  ;;  %v555_v22 = vmul.f32 %v495_v54, %v1277_v40 }
 0x19c   :  { %v503_v33 = vrot.slane %v499_v53, 1  ;;  %v513_v14 = vrot.slane %v509_v49, 2  ;;  %v523_v41 = vrot.slane %v519_v18, 3  ;;  %v569_v24 = vmul.f32 %v495_v54, %v1362_v47 }
 0x19d   :  { %v539_v50 = vrot.slane %v535_v19, 1  ;;  %v571_v9 = vmul.f32 %v495_v54, %v1365_v51  ;;  %v549_v55 = vrot.slane %v545_v63, 2  ;;  %v581_v10 = vmul.f32 %v495_v54, %v1368_v52 }
 0x19e   :  { %v507_v48 = vadd.f32 %v503_v33, %v497_v56  ;;  %v591_v45 = vmul.f32 %v495_v54, %v1371_v57  ;;  %v607_v49 = vmul.f32 %v495_v54, %v1377_v61  ;;  %v617_v53 = vmul.f32 %v495_v54, %v1380_v62 }
 0x19f   :  { %v543_v34 = vadd.f32 %v539_v50, %v533_v21  ;;  %v575_v31 = vrot.slane %v571_v9, 1  ;;  %v559_v59 = vrot.slane %v555_v22, 3  ;;  %v585_v23 = vrot.slane %v581_v10, 2 }
 0x1a0   :  { %v517_v8 = vadd.f32 %v513_v14, %v507_v48  ;;  %v605_v29 = vmul.f32 %v495_v54, %v1374_v58  ;;  %v611_v7 = vrot.slane %v607_v49, 1  ;;  %v627_v16 = vmul.f32 %v495_v54, %v1383_v2 }
 0x1a1   :  { %v553_v32 = vadd.f32 %v549_v55, %v543_v34  ;;  %v579_v43 = vadd.f32 %v575_v31, %v569_v24  ;;  %v595_v18 = vrot.slane %v591_v45, 3  ;;  %v621_v56 = vrot.slane %v617_v53, 2 }
 0x1a2   :  { %v527_v60 = vadd.f32 %v523_v41, %v517_v8  ;;  %v498_v19 = vmul.f32 %v1540_v3, %v1242_v25  ;;  %v615_v21 = vadd.f32 %v611_v7, %v605_v29  ;;  %v508_v14 = vmul.f32 %v1540_v3, %v1244_v26 }
 0x1a3   :  { %v563_v63 = vadd.f32 %v559_v59, %v553_v32  ;;  %v589_v33 = vadd.f32 %v585_v23, %v579_v43  ;;  %v496_v50 = vmul.f32 %v1540_v3, %v1235_v20  ;;  %v631_v48 = vrot.slane %v627_v16, 3 }
 0x1a4   :  { %v529_v22 = vadd.f32 %v527_v60, %v1386_v4  ;;  %v502_v24 = vrot.slane %v498_v19, 1  ;;  %v625_v9 = vadd.f32 %v621_v56, %v615_v21  ;;  %v512_v10 = vrot.slane %v508_v14, 2 }
 0x1a5   :  { %v565_v54 = vadd.f32 %v563_v63, %v1389_v5  ;;  %v599_v41 = vadd.f32 %v595_v18, %v589_v33  ;;  %v518_v45 = vmul.f32 %v1540_v3, %v1246_v27  ;;  %v534_v34 = vmul.f32 %v1540_v3, %v1271_v38 }
 0x1a6   :  { %v506_v55 = vadd.f32 %v502_v24, %v496_v50  ;;  %v635_v53 = vadd.f32 %v631_v48, %v625_v9  ;;  %v544_v8 = vmul.f32 %v1540_v3, %v1274_v39  ;;  %v531_v59 = vmax.f32 %v529_v22, 0.0 }
 0x1a7   :  { %v567_v31 = vmax.f32 %v565_v54, 0.0  ;;  %v601_v49 = vadd.f32 %v599_v41, %v1392_v6  ;;  %v532_v23 = vmul.f32 %v1540_v3, %v1268_v37  ;;  %v538_v29 = vrot.slane %v534_v34, 1 }
 0x1a8   :  { %v554_v32 = vmul.f32 %v1540_v3, %v1277_v40  ;;  %v637_v7 = vadd.f32 %v635_v53, %v1398_v15  ;;  %v516_v60 = vadd.f32 %v512_v10, %v506_v55  ;;  %v548_v56 = vrot.slane %v544_v8, 2 }
 0x1a9   :  { %v603_v43 = vmax.f32 %v601_v49, 0.0  ;;  %v643_v16 = vrot.slane %v567_v31, 7  ;;  %v542_v18 = vadd.f32 %v538_v29, %v532_v23  ;;  %v568_v19 = vmul.f32 %v1540_v3, %v1362_v47 }
 0x1aa   :  { %v570_v63 = vmul.f32 %v1540_v3, %v1365_v51  ;;  %v639_v33 = vmax.f32 %v637_v7, 0.0  ;;  %v580_v22 = vmul.f32 %v1540_v3, %v1368_v52  ;;  %v558_v24 = vrot.slane %v554_v32, 3 }
 0x1ab   :  { %v649_v21 = vrot.slane %v603_v43, 6  ;;  %v659_v14 = vsel %vm391_vm8, %v531_v59, %v643_v16  ;;  %v552_v50 = vadd.f32 %v548_v56, %v542_v18  ;;  %v590_v41 = vmul.f32 %v1540_v3, %v1371_v57 }
 0x1ac   :  { %v574_v54 = vrot.slane %v570_v63, 1  ;;  %v655_v9 = vrot.slane %v639_v33, 5  ;;  %v522_v55 = vrot.slane %v518_v45, 3  ;;  %v584_v31 = vrot.slane %v580_v22, 2 }
 0x1ad   :  { %v661_v48 = vsel %vm394_vm9, %v659_v14, %v649_v21  ;;  %v562_v10 = vadd.f32 %v558_v24, %v552_v50  ;;  %v606_v8 = vmul.f32 %v1540_v3, %v1377_v61  ;;  %v616_v23 = vmul.f32 %v1540_v3, %v1380_v62 }
 0x1ae   :  { %v578_v34 = vadd.f32 %v574_v54, %v568_v19  ;;  %v663_v49 = vsel %vm397_vm10, %v661_v48, %v655_v9  ;;  %v526_v53 = vadd.f32 %v522_v55, %v516_v60  ;;  %v594_v7 = vrot.slane %v590_v41, 3 }
 0x1af   :  { %v665_v29 = vsel %vm400_vm11, %v663_v49, %v531_v59  ;;  %v564_v32 = vadd.f32 %v562_v10, %v1389_v5  ;;  %v604_v18 = vmul.f32 %v1540_v3, %v1374_v58  ;;  %v610_v56 = vrot.slane %v606_v8, 1 }
 0x1b0   :  { %v588_v43 = vadd.f32 %v584_v31, %v578_v34  ;;  %v667_v45 = vsel %vm403_vm12, %v665_v29, %v643_v16  ;;  %v626_v60 = vmul.f32 %v1540_v3, %v1383_v2  ;;  %v528_v59 = vadd.f32 %v526_v53, %v1386_v4 }
 0x1b1   :  { %v669_v19 = vsel %vm406_vm13, %v667_v45, %v649_v21  ;;  %v566_v63 = vmax.f32 %v564_v32, 0.0  ;;  %v614_v22 = vadd.f32 %v610_v56, %v604_v18  ;;  %v620_v50 = vrot.slane %v616_v23, 2 }
 0x1b2   :  { %v598_v33 = vadd.f32 %v594_v7, %v588_v43  ;;  %v671_v14 = vsel %vm409_vm14, %v669_v19, %v655_v9  ;;  %v630_v41 = vrot.slane %v626_v60, 3  ;;  %v530_v55 = vmax.f32 %v528_v59, 0.0 }
 0x1b3   :  { %v673_v24 = vadd.f32 %v671_v14, %v1167_v1  ;;  %v624_v54 = vadd.f32 %v620_v50, %v614_v22  ;;  %v642_v48 = vrot.slane %v566_v63, 7 }
 0x1b4   :  { %v600_v16 = vadd.f32 %v598_v33, %v1392_v6 }
 0x1b5   :  { %676 = vrot.lane.b32.xlu1 %v673_v24, %s1090_s3  ;;  %v634_v21 = vadd.f32 %v630_v41, %v624_v54  ;;  %v658_v9 = vsel %vm391_vm8, %v530_v55, %v642_v48 }
 0x1b6   :  { %v602_v3 = vmax.f32 %v600_v16, 0.0 }
 0x1b7   :  { %v636_v34 = vadd.f32 %v634_v21, %v1398_v15 }
 0x1b8   :  { %v648_v10 = vrot.slane %v602_v3, 6 }
 0x1b9   :  { %684 = vrot.lane.b32.xlu1 %v673_v24, %s1087_s11  ;;  %v638_v31 = vmax.f32 %v636_v34, 0.0 }
 0x1ba   :  { %v660_v1 = vsel %vm394_vm9, %v658_v9, %v648_v10 }
 0x1bb   :  { %v654_v49 = vrot.slane %v638_v31, 5  ;;  %v711_v31 = vmul.f32 %v673_v24, %v1215_v13 }
 0x1bd   :  { %704 = vrot.lane.b32.xlu1 %v673_v24, %s1091_s18  ;;  %v662_v53 = vsel %vm397_vm10, %v660_v1, %v654_v49 }
 0x1be   :  { %v664_v8 = vsel %vm400_vm11, %v662_v53, %v530_v55 }
 0x1bf   :  { %v666_v23 = vsel %vm403_vm12, %v664_v8, %v642_v48 }
 0x1c0   :  { %v668_v29 = vsel %vm406_vm13, %v666_v23, %v648_v10 }
 0x1c1   :  { %694 = vrot.lane.b32.xlu1 %v673_v24, %s1092_s23  ;;  %v670_v32 = vsel %vm409_vm14, %v668_v29, %v654_v49 }
 0x1c2   :  { %v672_v43 = vadd.f32 %v670_v32, %v1161_v0  ;;  %v1816_v32 = vld [vmem:[#allocation17_spill] sm:$0xff] }
 0x1c4   :  { %674 = vrot.lane.b32.xlu0 %v672_v43, %s1090_s3  ;;  %v710_v53 = vmul.f32 %v672_v43, %v1209_v12 }
 0x1c5   :  { %716 = vrot.lane.b32.xlu1 %v673_v24, %s1093_s24 }
 0x1c8   :  { %682 = vrot.lane.b32.xlu0 %v672_v43, %s1087_s11  ;;  %s1097_s11 = smov [#allocation11]  }
 0x1c9   :  { %726 = vrot.lane.b32.xlu1 %v673_v24, %s1094_s25  ;;  %s940_s1 = sshll.u32 %s1097_s11, 4  ;;  %s941_s1 = int_to_ptr.vmem [resolvable:$true] %s940_s1 }
 0x1ca   :  { %s1052_s2 = scalar_lea.vmem %s941_s1, 256  ;;  %p1057_p13 = scmp.lt.s32.totalorder %s941_s1, %s941_s1 }
 0x1cb   :  { %p1053_p12 = scmp.ne.s32.totalorder %s941_s1, %s1052_s2  ;;  %p1058_p0 = scmp.lt.s32.totalorder %s1052_s2, %s1052_s2 }
 0x1cc   :  { %702 = vrot.lane.b32.xlu0 %v672_v43, %s1091_s18 }
 0x1cd   :  { %734 = vrot.lane.b32.xlu1 %v673_v24, %s1095_s26  ;;  %p1059_p1 = por %p1058_p0, %p1057_p13 }
 0x1cf   :  { %p1060_p2 = pnand %p1059_p1, %p1053_p12 }
 0x1d0   :  { %692 = vrot.lane.b32.xlu0 %v672_v43, %s1092_s23 }
 0x1d1   :  { %744 = vrot.lane.b32.xlu1 %v673_v24, %s1096_s27  ;;  %v1819_v24 = vld [vmem:[#allocation18_spill] sm:$0xff] }
 0x1d4   :  { %714 = vrot.lane.b32.xlu0 %v672_v43, %s1093_s24 }
 0x1d8   :  { %724 = vrot.lane.b32.xlu0 %v672_v43, %s1094_s25 }
 0x1dc   :  { %732 = vrot.lane.b32.xlu0 %v672_v43, %s1095_s26 }
 0x1e0   :  { %742 = vrot.lane.b32.xlu0 %v672_v43, %s1096_s27  ;;  %v1820_v43 = vld [vmem:[#allocation22_spill] sm:$0xff] }
 0x227   :  { %v677_v0 = vpop.permute.xlu1 %676 }
 0x22b   :  { %v685_v7 = vpop.permute.xlu1 %684 }
 0x22f   :  { %v705_v45 = vpop.permute.xlu1 %704 }
 0x233   :  { %v695_v56 = vpop.permute.xlu1 %694 }
 0x236   :  { %v675_v18 = vpop.permute.xlu0 %674 }
 0x237   :  { %v717_v63 = vpop.permute.xlu1 %716  ;;  %v678_v16 = vsel %vm123_vm2, %v675_v18, %v677_v0  ;;  %v679_v54 = vsel %vm123_vm2, %v677_v0, %v675_v18 }
 0x238   :  { %v680_v8 = vmul.f32 %v679_v54, %v1263_v36  ;;  %v681_v23 = vmul.f32 %v678_v16, %v1248_v28 }
 0x23a   :  { %v683_v60 = vpop.permute.xlu0 %682 }
 0x23b   :  { %v727_v14 = vpop.permute.xlu1 %726  ;;  %v686_v41 = vsel %vm132_vm1, %v683_v60, %v685_v7  ;;  %v687_v48 = vsel %vm132_vm1, %v685_v7, %v683_v60 }
 0x23c   :  { %v688_v29 = vmul.f32 %v687_v48, %v1261_v35  ;;  %v689_v0 = vmul.f32 %v686_v41, %v1816_v32  ;;  %v1822_v41 = vld [vmem:[#allocation25_spill] sm:$0xff] }
 0x23e   :  { %v703_v19 = vpop.permute.xlu0 %702 }
 0x23f   :  { %v706_v22 = vsel %vm154_vm0, %v703_v19, %v705_v45  ;;  %v707_v50 = vsel %vm154_vm0, %v705_v45, %v703_v19  ;;  %v735_v55 = vpop.permute.xlu1 %734  ;;  %v1817_v45 = vld [vmem:[#allocation19_spill] sm:$0xff] }
 0x240   :  { %v708_v1 = vmul.f32 %v707_v50, %v1252_v30  ;;  %v709_v49 = vmul.f32 %v706_v22, %v1224_v17  ;;  %v690_v22 = vadd.f32 %v688_v29, %v680_v8  ;;  %v691_v50 = vadd.f32 %v689_v0, %v681_v23 }
 0x242   :  { %v693_v33 = vpop.permute.xlu0 %692  ;;  %v712_v36 = vadd.f32 %v710_v53, %v708_v1 }
 0x243   :  { %v696_v21 = vsel %vm143_vm3, %v693_v33, %v695_v56  ;;  %v697_v10 = vsel %vm143_vm3, %v695_v56, %v693_v33  ;;  %v1818_v56 = vld [vmem:[#allocation21_spill] sm:$0xff] }
 0x244   :  { %v698_v7 = vmul.f32 %v697_v10, %v1812_v44  ;;  %v699_v18 = vmul.f32 %v696_v21, %v1817_v45  ;;  %v713_v44 = vadd.f32 %v711_v31, %v709_v49 }
 0x246   :  { %v715_v59 = vpop.permute.xlu0 %714  ;;  %v700_v10 = vadd.f32 %v698_v7, %v690_v22 }
 0x247   :  { %v718_v34 = vsel %vm167_vm4, %v715_v59, %v717_v63  ;;  %v719_v9 = vsel %vm167_vm4, %v717_v63, %v715_v59  ;;  %v1821_v63 = vld [vmem:[#allocation20_spill] sm:$0xff]  ;;  %v745_v59 = vpop.permute.xlu1 %744 }
 0x248   :  { %v720_v13 = vmul.f32 %v718_v34, %v1818_v56  ;;  %v721_v30 = vmul.f32 %v719_v9, %v1819_v24  ;;  %v701_v34 = vadd.f32 %v699_v18, %v691_v50 }
 0x24a   :  { %v725_v3 = vpop.permute.xlu0 %724  ;;  %v722_v16 = vadd.f32 %v720_v13, %v712_v36  ;;  %v723_v54 = vadd.f32 %v721_v30, %v713_v44 }
 0x24b   :  { %v728_v12 = vsel %vm178_vm5, %v725_v3, %v727_v14  ;;  %v729_v17 = vsel %vm178_vm5, %v727_v14, %v725_v3  ;;  %v1823_v14 = vld [vmem:[#allocation23_spill] sm:$0xff] }
 0x24c   :  { %v730_v48 = vmul.f32 %v728_v12, %v1822_v41  ;;  %v731_v3 = vmul.f32 %v729_v17, %v1823_v14  ;;  %v752_v8 = vadd.f32 %v722_v16, %v700_v10  ;;  %v753_v23 = vadd.f32 %v723_v54, %v701_v34 }
 0x24e   :  { %v733_v60 = vpop.permute.xlu0 %732 }
 0x24f   :  { %v736_v28 = vsel %vm187_vm6, %v733_v60, %v735_v55  ;;  %v737_v35 = vsel %vm187_vm6, %v735_v55, %v733_v60 }
 0x250   :  { %v738_v19 = vmul.f32 %v736_v28, %v1820_v43  ;;  %v739_v33 = vmul.f32 %v737_v35, %v1821_v63 }
 0x252   :  { %v743_v21 = vpop.permute.xlu0 %742  ;;  %v740_v31 = vadd.f32 %v738_v19, %v730_v48  ;;  %v741_v1 = vadd.f32 %v739_v33, %v731_v3 }
 0x253   :  { %v746_v55 = vsel %vm198_vm7, %v743_v21, %v745_v59  ;;  %v747_v9 = vsel %vm198_vm7, %v745_v59, %v743_v21 }
 0x254   :  { %v748_v49 = vmul.f32 %v746_v55, %v1814_v46  ;;  %v749_v53 = vmul.f32 %v747_v9, %v1815_v42 }
 0x256   :  { %v750_v29 = vadd.f32 %v748_v49, %v740_v31  ;;  %v751_v32 = vadd.f32 %v749_v53, %v741_v1 }
 0x258   :  { %v1677_v0 = vadd.f32 %v752_v8, %v750_v29  ;;  %v1679_v7 = vadd.f32 %v753_v23, %v751_v32 }
 0x25a   :  { %v758_v45 = vmul.f32 %v1677_v0, %v1242_v25  ;;  %v759_v11 = vmul.f32 %v1679_v7, %v1242_v25  ;;  %v768_v18 = vmul.f32 %v1677_v0, %v1244_v26  ;;  %v769_v46 = vmul.f32 %v1679_v7, %v1244_v26 }
 0x25b   :  { %v756_v42 = vmul.f32 %v1677_v0, %v1235_v20  ;;  %v757_v56 = vmul.f32 %v1679_v7, %v1235_v20  ;;  %v794_v25 = vmul.f32 %v1677_v0, %v1271_v38  ;;  %v795_v28 = vmul.f32 %v1679_v7, %v1271_v38 }
 0x25c   :  { %v762_v13 = vrot.slane %v758_v45, 1  ;;  %v763_v24 = vrot.slane %v759_v11, 1  ;;  %v772_v30 = vrot.slane %v768_v18, 2  ;;  %v773_v60 = vrot.slane %v769_v46, 2 }
 0x25d   :  { %v804_v26 = vmul.f32 %v1677_v0, %v1274_v39  ;;  %v805_v35 = vmul.f32 %v1679_v7, %v1274_v39  ;;  %v814_v20 = vmul.f32 %v1677_v0, %v1277_v40  ;;  %v815_v36 = vmul.f32 %v1679_v7, %v1277_v40 }
 0x25e   :  { %v766_v12 = vadd.f32 %v762_v13, %v756_v42  ;;  %v767_v17 = vadd.f32 %v763_v24, %v757_v56  ;;  %v792_v44 = vmul.f32 %v1677_v0, %v1268_v37  ;;  %v793_v43 = vmul.f32 %v1679_v7, %v1268_v37 }
 0x25f   :  { %v798_v19 = vrot.slane %v794_v25, 1  ;;  %v799_v38 = vrot.slane %v795_v28, 1  ;;  %v778_v59 = vmul.f32 %v1677_v0, %v1246_v27  ;;  %v779_v39 = vmul.f32 %v1679_v7, %v1246_v27 }
 0x260   :  { %v776_v63 = vadd.f32 %v772_v30, %v766_v12  ;;  %v777_v33 = vadd.f32 %v773_v60, %v767_v17  ;;  %v808_v16 = vrot.slane %v804_v26, 2  ;;  %v809_v40 = vrot.slane %v805_v35, 2 }
 0x261   :  { %v802_v22 = vadd.f32 %v798_v19, %v792_v44  ;;  %v803_v50 = vadd.f32 %v799_v38, %v793_v43  ;;  %v818_v54 = vrot.slane %v814_v20, 3  ;;  %v819_v41 = vrot.slane %v815_v36, 3 }
 0x262   :  { %v830_v48 = vmul.f32 %v1677_v0, %v1365_v51  ;;  %v831_v37 = vmul.f32 %v1679_v7, %v1365_v51  ;;  %v828_v21 = vmul.f32 %v1677_v0, %v1362_v47  ;;  %v829_v27 = vmul.f32 %v1679_v7, %v1362_v47 }
 0x263   :  { %v812_v14 = vadd.f32 %v808_v16, %v802_v22  ;;  %v813_v3 = vadd.f32 %v809_v40, %v803_v50  ;;  %v840_v55 = vmul.f32 %v1677_v0, %v1368_v52  ;;  %v841_v9 = vmul.f32 %v1679_v7, %v1368_v52 }
 0x264   :  { %v834_v10 = vrot.slane %v830_v48, 1  ;;  %v835_v34 = vrot.slane %v831_v37, 1  ;;  %v782_v31 = vrot.slane %v778_v59, 3  ;;  %v783_v1 = vrot.slane %v779_v39, 3 }
 0x265   :  { %v822_v49 = vadd.f32 %v818_v54, %v812_v14  ;;  %v823_v51 = vadd.f32 %v819_v41, %v813_v3  ;;  %v844_v23 = vrot.slane %v840_v55, 2  ;;  %v845_v29 = vrot.slane %v841_v9, 2 }
 0x266   :  { %v838_v53 = vadd.f32 %v834_v10, %v828_v21  ;;  %v839_v8 = vadd.f32 %v835_v34, %v829_v27  ;;  %v786_v32 = vadd.f32 %v782_v31, %v776_v63  ;;  %v787_v45 = vadd.f32 %v783_v1, %v777_v33 }
 0x267   :  { %v850_v47 = vmul.f32 %v1677_v0, %v1371_v57  ;;  %v851_v11 = vmul.f32 %v1679_v7, %v1371_v57  ;;  %v824_v18 = vadd.f32 %v822_v49, %v1389_v5  ;;  %v825_v52 = vadd.f32 %v823_v51, %v1389_v5 }
 0x268   :  { %v848_v46 = vadd.f32 %v844_v23, %v838_v53  ;;  %v849_v42 = vadd.f32 %v845_v29, %v839_v8  ;;  %v864_v24 = vmul.f32 %v1677_v0, %v1374_v58  ;;  %v865_v30 = vmul.f32 %v1679_v7, %v1374_v58 }
 0x269   :  { %v854_v56 = vrot.slane %v850_v47, 3  ;;  %v855_v13 = vrot.slane %v851_v11, 3  ;;  %v866_v60 = vmul.f32 %v1677_v0, %v1377_v61  ;;  %v867_v57 = vmul.f32 %v1679_v7, %v1377_v61 }
 0x26a   :  { %v876_v12 = vmul.f32 %v1677_v0, %v1380_v62  ;;  %v877_v5 = vmul.f32 %v1679_v7, %v1380_v62  ;;  %v886_v28 = vmul.f32 %v1677_v0, %v1383_v2  ;;  %v887_v58 = vmul.f32 %v1679_v7, %v1383_v2 }
 0x26b   :  { %v858_v17 = vadd.f32 %v854_v56, %v848_v46  ;;  %v859_v25 = vadd.f32 %v855_v13, %v849_v42  ;;  %v826_v26 = vmax.f32 %v824_v18, 0.0  ;;  %v827_v35 = vmax.f32 %v825_v52, 0.0 }
 0x26c   :  { %v870_v20 = vrot.slane %v866_v60, 1  ;;  %v871_v36 = vrot.slane %v867_v57, 1  ;;  %v788_v61 = vadd.f32 %v786_v32, %v1386_v4  ;;  %v789_v44 = vadd.f32 %v787_v45, %v1386_v4 }
 0x26d   :  { %v860_v43 = vadd.f32 %v858_v17, %v1392_v6  ;;  %v861_v62 = vadd.f32 %v859_v25, %v1392_v6  ;;  %v880_v63 = vrot.slane %v876_v12, 2  ;;  %v881_v33 = vrot.slane %v877_v5, 2 }
 0x26e   :  { %v874_v19 = vadd.f32 %v870_v20, %v864_v24  ;;  %v875_v38 = vadd.f32 %v871_v36, %v865_v30  ;;  %v890_v39 = vrot.slane %v886_v28, 3  ;;  %v891_v2 = vrot.slane %v887_v58, 3 }
 0x26f   :  { %v862_v0 = vmax.f32 %v860_v43, 0.0  ;;  %v863_v59 = vmax.f32 %v861_v62, 0.0  ;;  %v902_v50 = vrot.slane %v826_v26, 7  ;;  %v903_v16 = vrot.slane %v827_v35, 7 }
 0x270   :  { %v884_v7 = vadd.f32 %v880_v63, %v874_v19  ;;  %v885_v22 = vadd.f32 %v881_v33, %v875_v38  ;;  %v790_v40 = vmax.f32 %v788_v61, 0.0  ;;  %v791_v54 = vmax.f32 %v789_v44, 0.0 }
 0x271   :  { %v908_v48 = vrot.slane %v862_v0, 6  ;;  %v909_v37 = vrot.slane %v863_v59, 6 }
 0x272   :  { %v894_v41 = vadd.f32 %v890_v39, %v884_v7  ;;  %v895_v4 = vadd.f32 %v891_v2, %v885_v22  ;;  %v918_v3 = vsel %vm391_vm8, %v790_v40, %v902_v50  ;;  %v919_v21 = vsel %vm391_vm8, %v791_v54, %v903_v16 }
 0x273   :  { %v920_v34 = vsel %vm394_vm9, %v918_v3, %v908_v48  ;;  %v921_v55 = vsel %vm394_vm9, %v919_v21, %v909_v37 }
 0x274   :  { %v896_v6 = vadd.f32 %v894_v41, %v1398_v15  ;;  %v897_v14 = vadd.f32 %v895_v4, %v1398_v15 }
 0x276   :  { %v898_v27 = vmax.f32 %v896_v6, 0.0  ;;  %v899_v10 = vmax.f32 %v897_v14, 0.0 }
 0x278   :  { %v914_v9 = vrot.slane %v898_v27, 5  ;;  %v915_v31 = vrot.slane %v899_v10, 5 }
 0x27a   :  { %v922_v1 = vsel %vm397_vm10, %v920_v34, %v914_v9  ;;  %v923_v49 = vsel %vm397_vm10, %v921_v55, %v915_v31 }
 0x27b   :  { %v924_v15 = vsel %vm400_vm11, %v922_v1, %v790_v40  ;;  %v925_v51 = vsel %vm400_vm11, %v923_v49, %v791_v54 }
 0x27c   :  { %v926_v53 = vsel %vm403_vm12, %v924_v15, %v902_v50  ;;  %v927_v8 = vsel %vm403_vm12, %v925_v51, %v903_v16 }
 0x27d   :  { %v928_v23 = vsel %vm406_vm13, %v926_v53, %v908_v48  ;;  %v929_v29 = vsel %vm406_vm13, %v927_v8, %v909_v37 }
 0x27e   :  { %v930_v32 = vsel %vm409_vm14, %v928_v23, %v914_v9  ;;  %v931_v45 = vsel %vm409_vm14, %v929_v29, %v915_v31 }
 0x27f   :  { %932 = vst [vmem:[#allocation11] sm:$0xff] %v930_v32  ;;  %933 = vst [vmem:[#allocation11 + $0x8] sm:$0xff] %v931_v45 }
 0x280   :  { %1063 = shalt.err (!%p1060_p2)
}
 0x281   :  { %s1064_s23 = scalar_lea.hbm %s1783_s4, 256 }
 0x282   :  { %p1065_p3 = scmp.ne.s32.totalorder %s1783_s4, %s1064_s23  ;;  %p1068_p4 = scmp.lt.u32.totalorder %s1064_s23, %s1783_s4 }
 0x284   :  { %p1070_p5 = pnand %p1068_p4, %p1065_p3 }
 0x286   :  { %1073 = shalt.err (!%p1070_p5)
}
 0x287   :  { %943 = dma.vmem_to_hbm [thread:$0]  %s941_s1, 256, %s1783_s4, [#allocation4]  }
 0x288   :  { %1082 = dma.done.wait [#allocation4], 256  }
 0x289   :  { %1083 = vsyncadd [#allocation4], 4294967040 }
 0x28a   :  { %947 = vsyncpa [#allocation3], 1 }
 0x28b   :  { %948 = vsyncpa [#allocation7], 1 }
 0x28c   :  { %949 = vsyncpa [#allocation4], 1 }
 0x28d   :  { %950 = vsyncpa [#allocation5], 1 }
 0x28e   :  { %951 = vsyncpa [#allocation10], 1 }

</bundles_post_ra>
